<compile_context>
chip_gen: v6e
topology: v6e:2x2x1
jax: 0.10.0
libtpu: 0.0.40
codegen_flags: <defaults>
</compile_context>

<pallas_src>
import jax
import jax.numpy as jnp
from jax.experimental import pallas as pl
from jax.experimental.pallas import tpu as pltpu


def _make_kernel(n_valid, tile_n, d):
    """Returns the kernel body; closes over the static sizes."""

    def kernel(x_ref, wvu_ref, bvu_ref, wwt_ref, bw_ref, wc_ref, bc_ref,
               out_ref, m_ref, s_ref, acc_ref):
        i = pl.program_id(0)

        # ---- init running-softmax state on the first tile -------------------
        @pl.when(i == 0)
        def _init():
            m_ref[...] = jnp.full_like(m_ref, -jnp.inf)
            s_ref[...] = jnp.zeros_like(s_ref)
            acc_ref[...] = jnp.zeros_like(acc_ref)

        x = x_ref[...]                                            # (tile_n, L)

        # ---- gated attention: one fused matmul for Wv|Wu --------------------
        pre = jnp.dot(x, wvu_ref[...],
                      preferred_element_type=jnp.float32) + bvu_ref[...]
        a_v = jnp.tanh(pre[:, :d])                                # f32, EUP
        a_u = jax.nn.sigmoid(pre[:, d:])
        gated = (a_v * a_u).astype(wwt_ref.dtype)                 # (tile_n, D)

        # ---- lane-major scores: (K, D) x (tile_n, D) -> (K, tile_n) ---------
        scores = jax.lax.dot_general(
            wwt_ref[...], gated,
            dimension_numbers=(((1,), (1,)), ((), ())),
            preferred_element_type=jnp.float32) + bw_ref[...]     # (K, tile_n)

        # mask rows past the true N (x was zero-padded to a tile multiple)
        col = jax.lax.broadcasted_iota(jnp.int32, scores.shape, 1)
        valid = (i * tile_n + col) < n_valid
        scores = jnp.where(valid, scores, -jnp.inf)

        # ---- online softmax update (reductions along the lane axis) ---------
        m_old = m_ref[...]                                        # (K, 1)
        m_new = jnp.maximum(m_old, jnp.max(scores, axis=-1, keepdims=True))
        alpha = jnp.exp(m_old - m_new)                            # (K, 1)
        e = jnp.exp(scores - m_new)                               # (K, tile_n)
        s_ref[...] = alpha * s_ref[...] + jnp.sum(e, axis=-1, keepdims=True)
        acc_ref[...] = alpha * acc_ref[...] + jnp.dot(
            e.astype(x.dtype), x, preferred_element_type=jnp.float32)
        m_ref[...] = m_new

        # ---- finalize: normalize once, then the 1-fc classifier -------------
        @pl.when(i == pl.num_programs(0) - 1)
        def _finalize():
            inv_s = pl.reciprocal(s_ref[...], approx=False)
            afeat = (acc_ref[...] * inv_s).astype(wc_ref.dtype)   # (K, L)
            out_ref[...] = (jnp.dot(afeat, wc_ref[...],
                                    preferred_element_type=jnp.float32)
                            + bc_ref[...])

    return kernel


def attention_with_classifier(x, params, *, tile_n=128, compute_dtype=None):
    """Fused gated-attention + classifier.

    compute_dtype: dtype fed to the MXU matmuls (e.g. jnp.bfloat16 on v6e/v7x).
    Activations, softmax and accumulation always stay in float32.
    """
    wv, bv, wu, bu, ww, bw, wc, bc = params
    n, l = x.shape
    d = wv.shape[1]
    k = ww.shape[1]
    c = wc.shape[1]

    mm_dtype = x.dtype if compute_dtype is None else compute_dtype

    # Fuse Wv|Wu into one (L, 2D) weight; store Ww transposed (K, D) so the
    # kernel produces lane-major (K, tile_n) scores with no transposes.
    wvu = jnp.concatenate([wv, wu], axis=1).astype(mm_dtype)      # (L, 2D)
    bvu = jnp.concatenate([bv, bu], axis=1).astype(jnp.float32)   # (1, 2D)
    ww_t = ww.T.astype(mm_dtype)                                  # (K, D)
    bw_c = bw.reshape(k, 1).astype(jnp.float32)                   # (K, 1)
    wc_m = wc.astype(mm_dtype)                                    # (L, C)
    bc_m = bc.astype(jnp.float32)                                 # (1, C)
    x_m = x.astype(mm_dtype)

    # Pad N to a tile multiple; padded rows are masked to -inf in-kernel.
    n_tiles = pl.cdiv(n, tile_n)
    n_pad = n_tiles * tile_n
    if n_pad != n:
        x_m = jnp.pad(x_m, ((0, n_pad - n), (0, 0)))

    itemsize = jnp.dtype(mm_dtype).itemsize
    cost = pl.CostEstimate(
        flops=int(2 * n * l * 2 * d + 2 * n * d * k + 2 * n * k * l
                  + 2 * k * l * c),
        transcendentals=int(2 * n * d + n * k),
        bytes_accessed=int(n_pad * l * itemsize
                           + (l * 2 * d + k * d + l * c) * itemsize
                           + (2 * d + k + c + k * c) * 4),
    )

    kernel = _make_kernel(n, tile_n, d)

    return pl.pallas_call(
        kernel,
        out_shape=jax.ShapeDtypeStruct((k, c), jnp.float32),
        grid_spec=pltpu.PrefetchScalarGridSpec(
            num_scalar_prefetch=0,
            grid=(n_tiles,),
            in_specs=[
                pl.BlockSpec((tile_n, l), lambda i: (i, 0)),      # x (streamed)
                pl.BlockSpec((l, 2 * d), lambda i: (0, 0)),       # Wv|Wu (resident)
                pl.BlockSpec((1, 2 * d), lambda i: (0, 0)),       # bv|bu
                pl.BlockSpec((k, d), lambda i: (0, 0)),           # Ww^T
                pl.BlockSpec((k, 1), lambda i: (0, 0)),           # bw
                pl.BlockSpec((l, c), lambda i: (0, 0)),           # Wc
                pl.BlockSpec((1, c), lambda i: (0, 0)),           # bc
            ],
            out_specs=pl.BlockSpec((k, c), lambda i: (0, 0)),
            scratch_shapes=[
                pltpu.VMEM((k, 1), jnp.float32),   # running max  m
                pltpu.VMEM((k, 1), jnp.float32),   # running sum  s
                pltpu.VMEM((k, l), jnp.float32),   # unnormalized accumulator
            ],
        ),
        compiler_params=pltpu.CompilerParams(
            # N is a reduction axis; keep it sequential. A bag/batch axis (if
            # ever added) would become a leading "parallel" axis (megacore).
            dimension_semantics=("arbitrary",),
            # Fits every generation's scoped VMEM (v7x physical is 64 MiB).
            vmem_limit_bytes=32 * 1024 * 1024,
        ),
        cost_estimate=cost,
    )(x_m, wvu, bvu, ww_t, bw_c, wc_m, bc_m)


def init_params(key, L, D, K, num_cls):
    ks = jax.random.split(key, 8)
    scale_l = 1.0 / jnp.sqrt(L)
    scale_d = 1.0 / jnp.sqrt(D)
    wv = jax.random.uniform(ks[0], (L, D), jnp.float32, -scale_l, scale_l)
    bv = jax.random.uniform(ks[1], (1, D), jnp.float32, -scale_l, scale_l)
    wu = jax.random.uniform(ks[2], (L, D), jnp.float32, -scale_l, scale_l)
    bu = jax.random.uniform(ks[3], (1, D), jnp.float32, -scale_l, scale_l)
    ww = jax.random.uniform(ks[4], (D, K), jnp.float32, -scale_d, scale_d)
    bw = jax.random.uniform(ks[5], (1, K), jnp.float32, -scale_d, scale_d)
    wc = jax.random.uniform(ks[6], (L, num_cls), jnp.float32, -scale_l, scale_l)
    bc = jax.random.uniform(ks[7], (1, num_cls), jnp.float32, -scale_l, scale_l)
    return (wv, bv, wu, bu, ww, bw, wc, bc)


def reference(x, params):
    wv, bv, wu, bu, ww, bw, wc, bc = params
    a_v = jnp.tanh(x @ wv + bv)
    a_u = jax.nn.sigmoid(x @ wu + bu)
    a = (a_v * a_u) @ ww + bw             # (N, K)
    a = a.T                               # (K, N)
    a = jax.nn.softmax(a, axis=1)
    afeat = a @ x                         # (K, L)
    return afeat @ wc + bc                # (K, num_cls)


if __name__ == "__main__":
    # Module defaults: L=512, D=128, K=1, num_cls=2.  A bag of N=300 instances;
    # N is NOT a multiple of tile_n=128, so the padded-row masking path and the
    # multi-tile online softmax are both exercised.
    N, L, D, K, num_cls = 300, 512, 128, 1, 2

    key = jax.random.PRNGKey(0)
    kx, kp = jax.random.split(key)
    x = jax.random.normal(kx, (N, L), jnp.float32)
    params = init_params(kp, L, D, K, num_cls)

    # f32 path (all generations).
    pred = attention_with_classifier(x, params, tile_n=128)
    pred = jax.block_until_ready(pred)

    ref = reference(x, params)
    assert pred.shape == (K, num_cls)
    assert jnp.allclose(pred, ref, atol=1e-4, rtol=1e-4), (pred, ref)

    # bf16 MXU path (recommended on v6e/v7x; f32 softmax/accumulation kept).
    pred_bf16 = attention_with_classifier(
        x, params, tile_n=128, compute_dtype=jnp.bfloat16)
    pred_bf16 = jax.block_until_ready(pred_bf16)
    assert pred_bf16.shape == (K, num_cls)
    assert bool(jnp.all(jnp.isfinite(pred_bf16)))

    print("KERNEL_OK")
</pallas_src>

<mosaic_0001>
module attributes {stable_mosaic.version = 11 : i64} {
  func.func @kernel(%arg0: i32, %arg1: memref<128x512xf32, #tpu.memory_space<vmem>>, %arg2: memref<512x256xf32, #tpu.memory_space<vmem>>, %arg3: memref<1x256xf32, #tpu.memory_space<vmem>>, %arg4: memref<1x128xf32, #tpu.memory_space<vmem>>, %arg5: memref<1x1xf32, #tpu.memory_space<vmem>>, %arg6: memref<512x2xf32, #tpu.memory_space<vmem>>, %arg7: memref<1x2xf32, #tpu.memory_space<vmem>>, %arg8: memref<1x2xf32, #tpu.memory_space<vmem>>, %arg9: memref<1x1xf32, #tpu.memory_space<vmem>>, %arg10: memref<1x1xf32, #tpu.memory_space<vmem>>, %arg11: memref<1x512xf32, #tpu.memory_space<vmem>>) attributes {dimension_semantics = [#tpu.dimension_semantics<arbitrary>], iteration_bounds = array<i64: 3>, scalar_prefetch = 0 : i64, scratch_operands = 3 : i64, tpu.core_type = #tpu.core_type<tc>, window_params = [{transform_indices = @transform_0, window_bounds = array<i64: 128, 512>}, {pipeline_mode = #tpu.pipeline_mode<synchronous>, transform_indices = @transform_1, window_bounds = array<i64: 512, 256>}, {pipeline_mode = #tpu.pipeline_mode<synchronous>, transform_indices = @transform_2, window_bounds = array<i64: 1, 256>}, {pipeline_mode = #tpu.pipeline_mode<synchronous>, transform_indices = @transform_3, window_bounds = array<i64: 1, 128>}, {pipeline_mode = #tpu.pipeline_mode<synchronous>, transform_indices = @transform_4, window_bounds = array<i64: 1, 1>}, {pipeline_mode = #tpu.pipeline_mode<synchronous>, transform_indices = @transform_5, window_bounds = array<i64: 512, 2>}, {pipeline_mode = #tpu.pipeline_mode<synchronous>, transform_indices = @transform_6, window_bounds = array<i64: 1, 2>}, {pipeline_mode = #tpu.pipeline_mode<synchronous>, transform_indices = @transform_7, window_bounds = array<i64: 1, 2>}]} {
    %c0_i32 = arith.constant 0 : i32
    %0 = arith.cmpi eq, %arg0, %c0_i32 : i32
    %1 = arith.extui %0 : i1 to i32
    %c0_i32_0 = arith.constant 0 : i32
    %2 = arith.cmpi ne, %1, %c0_i32_0 : i32
    scf.if %2 {
      %cst_29 = arith.constant 0xFF800000 : f32
      %56 = vector.broadcast %cst_29 : f32 to vector<1x1xf32>
      %c0_30 = arith.constant 0 : index
      %c0_31 = arith.constant 0 : index
      %57 = vector.load %arg9[%c0_30, %c0_31] : memref<1x1xf32, #tpu.memory_space<vmem>>, vector<1x1xf32>
      tpu.vector_store %arg9[%c0_30, %c0_31], %56 {strides = array<i32>} : memref<1x1xf32, #tpu.memory_space<vmem>>, vector<1x1xf32>,
      %cst_32 = arith.constant 0.000000e+00 : f32
      %58 = vector.broadcast %cst_32 : f32 to vector<1x1xf32>
      %c0_33 = arith.constant 0 : index
      %c0_34 = arith.constant 0 : index
      %59 = vector.load %arg10[%c0_33, %c0_34] : memref<1x1xf32, #tpu.memory_space<vmem>>, vector<1x1xf32>
      tpu.vector_store %arg10[%c0_33, %c0_34], %58 {strides = array<i32>} : memref<1x1xf32, #tpu.memory_space<vmem>>, vector<1x1xf32>,
      %cst_35 = arith.constant 0.000000e+00 : f32
      %60 = vector.broadcast %cst_35 : f32 to vector<1x512xf32>
      %c0_36 = arith.constant 0 : index
      %c0_37 = arith.constant 0 : index
      %61 = vector.load %arg11[%c0_36, %c0_37] : memref<1x512xf32, #tpu.memory_space<vmem>>, vector<1x512xf32>
      tpu.vector_store %arg11[%c0_36, %c0_37], %60 {strides = array<i32>} : memref<1x512xf32, #tpu.memory_space<vmem>>, vector<1x512xf32>,
    } else {
    }
    %c0 = arith.constant 0 : index
    %c0_1 = arith.constant 0 : index
    %3 = vector.load %arg1[%c0, %c0_1] : memref<128x512xf32, #tpu.memory_space<vmem>>, vector<128x512xf32>
    %c0_2 = arith.constant 0 : index
    %c0_3 = arith.constant 0 : index
    %4 = vector.load %arg2[%c0_2, %c0_3] : memref<512x256xf32, #tpu.memory_space<vmem>>, vector<512x256xf32>
    %cst = arith.constant dense<0.000000e+00> : vector<128x256xf32>
    %5 = tpu.matmul %3, %4, %cst {dimension_numbers = #tpu.dot_dimension_numbers<[1], [0], [0], [1], [0, 0, 1, 1], [], []>} : vector<128x512xf32>, vector<512x256xf32>, vector<128x256xf32> -> vector<128x256xf32>
    %c0_4 = arith.constant 0 : index
    %c0_5 = arith.constant 0 : index
    %6 = vector.load %arg3[%c0_4, %c0_5] : memref<1x256xf32, #tpu.memory_space<vmem>>, vector<1x256xf32>
    %7 = vector.broadcast %6 : vector<1x256xf32> to vector<128x256xf32>
    %8 = arith.addf %5, %7 : vector<128x256xf32>
    %9 = vector.extract_strided_slice %8 {offsets = [0, 0], sizes = [128, 128], strides = [1, 1]} : vector<128x256xf32> to vector<128x128xf32>
    %10 = math.tanh %9 : vector<128x128xf32>
    %11 = vector.extract_strided_slice %8 {offsets = [0, 128], sizes = [128, 128], strides = [1, 1]} : vector<128x256xf32> to vector<128x128xf32>
    %12 = arith.negf %11 : vector<128x128xf32>
    %13 = math.exp %12 : vector<128x128xf32>
    %cst_6 = arith.constant 1.000000e+00 : f32
    %14 = vector.broadcast %cst_6 : f32 to vector<128x128xf32>
    %15 = arith.addf %14, %13 : vector<128x128xf32>
    %16 = arith.divf %14, %15 : vector<128x128xf32>
    %17 = arith.mulf %10, %16 : vector<128x128xf32>
    %c0_7 = arith.constant 0 : index
    %c0_8 = arith.constant 0 : index
    %18 = vector.load %arg4[%c0_7, %c0_8] : memref<1x128xf32, #tpu.memory_space<vmem>>, vector<1x128xf32>
    %cst_9 = arith.constant dense<0.000000e+00> : vector<1x128xf32>
    %19 = tpu.matmul %18, %17, %cst_9 {dimension_numbers = #tpu.dot_dimension_numbers<[1], [1], [0], [0], [0, 0, 1, 0], [], []>} : vector<1x128xf32>, vector<128x128xf32>, vector<1x128xf32> -> vector<1x128xf32>
    %c0_10 = arith.constant 0 : index
    %c0_11 = arith.constant 0 : index
    %20 = vector.load %arg5[%c0_10, %c0_11] : memref<1x1xf32, #tpu.memory_space<vmem>>, vector<1x1xf32>
    %21 = vector.broadcast %20 : vector<1x1xf32> to vector<1x128xf32>
    %22 = arith.addf %19, %21 : vector<1x128xf32>
    %23 = tpu.iota {dimensions = array<i32: 1>} : vector<1x128xi32>
    %c128_i32 = arith.constant 128 : i32
    %24 = arith.muli %arg0, %c128_i32 : i32
    %25 = vector.broadcast %24 : i32 to vector<1x128xi32>
    %26 = arith.addi %25, %23 : vector<1x128xi32>
    %c300_i32 = arith.constant 300 : i32
    %27 = vector.broadcast %c300_i32 : i32 to vector<1x128xi32>
    %28 = arith.cmpi slt, %26, %27 : vector<1x128xi32>
    %cst_12 = arith.constant 0xFF800000 : f32
    %29 = vector.broadcast %cst_12 : f32 to vector<1x128xf32>
    %30 = arith.select %28, %22, %29 : vector<1x128xi1>, vector<1x128xf32>
    %c0_13 = arith.constant 0 : index
    %c0_14 = arith.constant 0 : index
    %31 = vector.load %arg9[%c0_13, %c0_14] : memref<1x1xf32, #tpu.memory_space<vmem>>, vector<1x1xf32>
    %cst_15 = arith.constant dense<0xFF800000> : vector<1xf32>
    %32 = vector.multi_reduction <maximumf>, %30, %cst_15 [1] : vector<1x128xf32> to vector<1xf32>
    %33 = vector.shape_cast %32 : vector<1xf32> to vector<1x1xf32>
    %34 = arith.maximumf %31, %33 : vector<1x1xf32>
    %35 = arith.subf %31, %34 : vector<1x1xf32>
    %36 = math.exp %35 : vector<1x1xf32>
    %37 = vector.broadcast %34 : vector<1x1xf32> to vector<1x128xf32>
    %38 = arith.subf %30, %37 : vector<1x128xf32>
    %39 = math.exp %38 : vector<1x128xf32>
    %c0_16 = arith.constant 0 : index
    %c0_17 = arith.constant 0 : index
    %40 = vector.load %arg10[%c0_16, %c0_17] : memref<1x1xf32, #tpu.memory_space<vmem>>, vector<1x1xf32>
    %41 = arith.mulf %36, %40 : vector<1x1xf32>
    %cst_18 = arith.constant dense<0.000000e+00> : vector<1xf32>
    %42 = vector.multi_reduction <add>, %39, %cst_18 [1] : vector<1x128xf32> to vector<1xf32>
    %43 = vector.shape_cast %42 : vector<1xf32> to vector<1x1xf32>
    %44 = arith.addf %41, %43 : vector<1x1xf32>
    %c0_19 = arith.constant 0 : index
    %c0_20 = arith.constant 0 : index
    %45 = vector.load %arg10[%c0_19, %c0_20] : memref<1x1xf32, #tpu.memory_space<vmem>>, vector<1x1xf32>
    tpu.vector_store %arg10[%c0_19, %c0_20], %44 {strides = array<i32>} : memref<1x1xf32, #tpu.memory_space<vmem>>, vector<1x1xf32>,
    %c0_21 = arith.constant 0 : index
    %c0_22 = arith.constant 0 : index
    %46 = vector.load %arg11[%c0_21, %c0_22] : memref<1x512xf32, #tpu.memory_space<vmem>>, vector<1x512xf32>
    %47 = vector.broadcast %36 : vector<1x1xf32> to vector<1x512xf32>
    %48 = arith.mulf %47, %46 : vector<1x512xf32>
    %cst_23 = arith.constant dense<0.000000e+00> : vector<1x512xf32>
    %49 = tpu.matmul %39, %3, %cst_23 {dimension_numbers = #tpu.dot_dimension_numbers<[1], [0], [0], [1], [0, 0, 1, 1], [], []>} : vector<1x128xf32>, vector<128x512xf32>, vector<1x512xf32> -> vector<1x512xf32>
    %50 = arith.addf %48, %49 : vector<1x512xf32>
    %c0_24 = arith.constant 0 : index
    %c0_25 = arith.constant 0 : index
    %51 = vector.load %arg11[%c0_24, %c0_25] : memref<1x512xf32, #tpu.memory_space<vmem>>, vector<1x512xf32>
    tpu.vector_store %arg11[%c0_24, %c0_25], %50 {strides = array<i32>} : memref<1x512xf32, #tpu.memory_space<vmem>>, vector<1x512xf32>,
    %c0_26 = arith.constant 0 : index
    %c0_27 = arith.constant 0 : index
    %52 = vector.load %arg9[%c0_26, %c0_27] : memref<1x1xf32, #tpu.memory_space<vmem>>, vector<1x1xf32>
    tpu.vector_store %arg9[%c0_26, %c0_27], %34 {strides = array<i32>} : memref<1x1xf32, #tpu.memory_space<vmem>>, vector<1x1xf32>,
    %c2_i32 = arith.constant 2 : i32
    %53 = arith.cmpi eq, %arg0, %c2_i32 : i32
    %54 = arith.extui %53 : i1 to i32
    %c0_i32_28 = arith.constant 0 : i32
    %55 = arith.cmpi ne, %54, %c0_i32_28 : i32
    scf.if %55 {
      %c0_29 = arith.constant 0 : index
      %c0_30 = arith.constant 0 : index
      %56 = vector.load %arg10[%c0_29, %c0_30] : memref<1x1xf32, #tpu.memory_space<vmem>>, vector<1x1xf32>
      %57 = tpu.reciprocal %56 : vector<1x1xf32> -> vector<1x1xf32>
      %c0_31 = arith.constant 0 : index
      %c0_32 = arith.constant 0 : index
      %58 = vector.load %arg11[%c0_31, %c0_32] : memref<1x512xf32, #tpu.memory_space<vmem>>, vector<1x512xf32>
      %59 = vector.broadcast %57 : vector<1x1xf32> to vector<1x512xf32>
      %60 = arith.mulf %58, %59 : vector<1x512xf32>
      %c0_33 = arith.constant 0 : index
      %c0_34 = arith.constant 0 : index
      %61 = vector.load %arg6[%c0_33, %c0_34] : memref<512x2xf32, #tpu.memory_space<vmem>>, vector<512x2xf32>
      %cst_35 = arith.constant dense<0.000000e+00> : vector<1x2xf32>
      %62 = tpu.matmul %60, %61, %cst_35 {dimension_numbers = #tpu.dot_dimension_numbers<[1], [0], [0], [1], [0, 0, 1, 1], [], []>} : vector<1x512xf32>, vector<512x2xf32>, vector<1x2xf32> -> vector<1x2xf32>
      %c0_36 = arith.constant 0 : index
      %c0_37 = arith.constant 0 : index
      %63 = vector.load %arg7[%c0_36, %c0_37] : memref<1x2xf32, #tpu.memory_space<vmem>>, vector<1x2xf32>
      %64 = arith.addf %62, %63 : vector<1x2xf32>
      %c0_38 = arith.constant 0 : index
      %c0_39 = arith.constant 0 : index
      %65 = vector.load %arg8[%c0_38, %c0_39] : memref<1x2xf32, #tpu.memory_space<vmem>>, vector<1x2xf32>
      tpu.vector_store %arg8[%c0_38, %c0_39], %64 {strides = array<i32>} : memref<1x2xf32, #tpu.memory_space<vmem>>, vector<1x2xf32>,
    } else {
    }
    return
  }
  func.func @transform_0(%arg0: i32) -> (i32, i32) {
    %c0_i32 = arith.constant 0 : i32
    %c0_i32_0 = arith.constant 0 : i32
    return %arg0, %c0_i32 : i32, i32
  }
  func.func @transform_1(%arg0: i32) -> (i32, i32) {
    %c0_i32 = arith.constant 0 : i32
    %c0_i32_0 = arith.constant 0 : i32
    %c0_i32_1 = arith.constant 0 : i32
    return %c0_i32, %c0_i32_0 : i32, i32
  }
  func.func @transform_2(%arg0: i32) -> (i32, i32) {
    %c0_i32 = arith.constant 0 : i32
    %c0_i32_0 = arith.constant 0 : i32
    %c0_i32_1 = arith.constant 0 : i32
    return %c0_i32, %c0_i32_0 : i32, i32
  }
  func.func @transform_3(%arg0: i32) -> (i32, i32) {
    %c0_i32 = arith.constant 0 : i32
    %c0_i32_0 = arith.constant 0 : i32
    %c0_i32_1 = arith.constant 0 : i32
    return %c0_i32, %c0_i32_0 : i32, i32
  }
  func.func @transform_4(%arg0: i32) -> (i32, i32) {
    %c0_i32 = arith.constant 0 : i32
    %c0_i32_0 = arith.constant 0 : i32
    %c0_i32_1 = arith.constant 0 : i32
    return %c0_i32, %c0_i32_0 : i32, i32
  }
  func.func @transform_5(%arg0: i32) -> (i32, i32) {
    %c0_i32 = arith.constant 0 : i32
    %c0_i32_0 = arith.constant 0 : i32
    %c0_i32_1 = arith.constant 0 : i32
    return %c0_i32, %c0_i32_0 : i32, i32
  }
  func.func @transform_6(%arg0: i32) -> (i32, i32) {
    %c0_i32 = arith.constant 0 : i32
    %c0_i32_0 = arith.constant 0 : i32
    %c0_i32_1 = arith.constant 0 : i32
    return %c0_i32, %c0_i32_0 : i32, i32
  }
  func.func @transform_7(%arg0: i32) -> (i32, i32) {
    %c0_i32 = arith.constant 0 : i32
    %c0_i32_0 = arith.constant 0 : i32
    %c0_i32_1 = arith.constant 0 : i32
    return %c0_i32, %c0_i32_0 : i32, i32
  }
}

</mosaic_0001>

<bundles_post_ra>
// kernel: tpu_custom_call.1
= control target key start
LH: loop header
LB: loop body
LE: loop exit
PB: predicated region body
PF: predicated region fallthrough
CT: control target
= control target key end

     0   :  { %s2875_s0 = inlined_call_operand.hbm [shape: f32[384,512], index: 0, kind: input, shape index: {}]   ;;  %s2876_s1 = inlined_call_operand.hbm [shape: f32[512,256], index: 1, kind: input, shape index: {}]   ;;  %s2877_s2 = inlined_call_operand.vmem [shape: f32[1,256], index: 2, kind: input, shape index: {}]   ;;  %s2878_s3 = inlined_call_operand.vmem [shape: f32[1,128], index: 3, kind: input, shape index: {}]   ;;  %s2879_s4 = inlined_call_operand.<no memory space> [shape: f32[1,1], index: 4, kind: input, shape index: {}]   ;;  %s2880_s5 = inlined_call_operand.vmem [shape: f32[512,2], index: 5, kind: input, shape index: {}]   ;;  %s2881_s6 = inlined_call_operand.vmem [shape: f32[1,2], index: 6, kind: input, shape index: {}]   ;;  %s2882_s7 = inlined_call_operand.hbm [shape: f32[1,2], index: 7, kind: output, shape index: {}]  }
   0x1   :  { %v12_v0 = vstv %s2879_s4 }
   0x2   :  { %13 = vst [vmem:[#allocation5] sm:$0x1] %v12_v0 }
   0x3   :  { %14 = vsyncpa [#allocation7], 0 }
   0x4   :  { %16 = vsyncpa [#allocation7 + $0x1], 0 }
   0x5   :  { %17 = vsyncpa [#allocation10], 0 }
   0x6   :  { %18 = vsyncpa [#allocation8], 0  ;;  %s2100_s26 = smov 0   ;;  %s2102_s27 = smov 0  }
   0x7   :  { %s2104_s28 = smov 0   ;;  %s2106_s29 = smov 0  }
   0x8 LB: > { %s2119_s4 = sadd.s32 4294967295, %s2041_s29   ;;  %p44_p0 = scmp.ne.s32.totalorder %s2033_s27, %s2029_s26  ;;  %s2041_s29 = sphi %s2106_s29, %s2974_s29   ;;  %s2037_s28 = sphi %s2104_s28, %s2973_s28   ;;  %s2033_s27 = sphi %s2102_s27, %s2972_s27   ;;  %s2029_s26 = sphi %s2100_s26, %s2971_s26  }
   0x9   : > { %p2883_p1 = scmp.eq.s32.totalorder %s2119_s4, 0  ;;  %p1589_p2 = scmp.ge.s32.totalorder %s2041_s29, 1 }
   0xa   : > { %p202_p3 = scmp.lt.s32.totalorder %s2041_s29, 4  ;;  %s2043_s9 = smov [#allocation9]  }
   0xb   : > { %p2128_p5 = por %p2883_p1, %p44_p0  ;;  %s214_s10 = sshll.u32 %s2043_s9, 4  ;;  %s215_s10 = int_to_ptr.vmem [resolvable:$true] %s214_s10 }
   0xc   : > { %p2132_p6 = pnand %p1589_p2, %p202_p3  ;;  %s2145_s12 = sadd.s32 1, %s2041_s29  }
   0xd   : > { %s2915_s30 = scalar_select %p2128_p5, 1, 0 }
   0xe   : > { %s2916_s8 = scalar_select %p2132_p6, 1, 0 }
   0xf   : > { %p1756_p7 = pneg %p2132_p6  ;;  %s31_s13 = sadd.s32 1, %s2037_s28 }
  0x10   : > { %s28_s14 = ssub.s32 %s2041_s29, %s2145_s12  ;;  %s1932_s15 = scalar_lea.vmem %s215_s10, 16384 }
  0x11   : > { %p2140_p8 = pnand %p1756_p7, %p2883_p1  ;;  %p1933_p10 = scmp.ne.s32.totalorder %s215_s10, %s1932_s15 }
  0x12   : > { %p1940_p13 = scmp.lt.s32.totalorder %s215_s10, %s215_s10  ;;  %p1941_p0 = scmp.lt.s32.totalorder %s1932_s15, %s1932_s15 }
  0x13   : > { %p1923_p9 = pneg %p2140_p8 }
  0x14   : > { %p1942_p2 = por %p1941_p0, %p1940_p13 }
  0x15   : > { %p1935_p11 = pnand %p1933_p10, %p1923_p9 }
  0x17   : > { %p1936_p12 = pneg %p1935_p11 }
  0x19   : > { %p1943_p3 = pnand %p1942_p2, %p1936_p12 }
  0x1b   : > { %1946 = shalt.err (!%p1943_p3)
}
  0x1c   : > { %s2044_s16 = smov 256   ;;  %s2045_s17 = smov 16  }
  0x1d   : > { %1759 = dma.hbm_to_vmem [thread:$0]  (!%p2140_p8), %s2876_s1, 16384, %s215_s10, [#allocation10], %s2044_s16, %s2044_s16, %s2045_s17  }
  0x1e   : > { %p29_p7 = scmp.eq.s32.totalorder %s28_s14, 0  ;;  %p38_p9 = scmp.ne.s32.totalorder %s2037_s28, %s2033_s27 }
  0x1f   : > { %p39_p10 = scmp.eq.s32.totalorder %s2041_s29, 0  ;;  %p1765_p11 = scmp.lt.s32.totalorder %s2041_s29, 3 }
  0x20   : > { %s2162_s20 = scalar_select %p29_p7, %s2037_s28, %s31_s13  }
  0x21   : > { %p40_p12 = por %p39_p10, %p38_p9  ;;  %s243_s21 = sand.u32 1, %s2037_s28  }
  0x22   : > { %s1592_s22 = sshll.u32 %s243_s21, 9  ;;  %s1623_s23 = sshll.u32 %s2041_s29, 13 }
  0x23   : > { %s2169_s26 = scalar_lea.hbm %s2875_s0, %s1623_s23  ;;  %s247_s9 = scalar_lea.vmem [#allocation6], %s1592_s22 }
  0x24   : > { %s255_s10 = sshll.u32 %s247_s9, 4  ;;  %p2173_p8 = pnand %p1765_p11, %p40_p12  ;;  %s2171_s10 = int_to_ptr.vmem [resolvable:$true] %s255_s10 }
  0x25   : > { %s2177_s13 = scalar_lea.sflag [#allocation7], %s243_s21  ;;  %s1947_s29 = scalar_lea.hbm %s2169_s26, 8192 }
  0x26   : > { %p1948_p13 = scmp.ne.s32.totalorder %s2169_s26, %s1947_s29  ;;  %p1949_p0 = pneg %p2173_p8 }
  0x27   : > { %s1952_s16 = scalar_lea.hbm %s2875_s0, 24576  ;;  %p1953_p7 = scmp.lt.s32.totalorder %s2169_s26, %s2875_s0 }
  0x28   : > { %p1950_p2 = pnand %p1949_p0, %p1948_p13  ;;  %p1954_p9 = scmp.lt.s32.totalorder %s1952_s16, %s1947_s29 }
  0x2a   : > { %p1951_p3 = pneg %p1950_p2  ;;  %p1955_p10 = por %p1954_p9, %p1953_p7 }
  0x2c   : > { %p1956_p11 = pnand %p1955_p10, %p1951_p3 }
  0x2e   : > { %1959 = shalt.err (!%p1956_p11)
}
  0x2f   : > { %s1960_s19 = scalar_lea.vmem %s2171_s10, 8192  ;;  %s2046_s21 = smov [#allocation6]  }
  0x30   : > { %p1961_p12 = scmp.ne.s32.totalorder %s2171_s10, %s1960_s19  ;;  %s1965_s22 = sshll.u32 %s2046_s21, 4  ;;  %s1966_s22 = int_to_ptr.vmem [resolvable:$false] %s1965_s22 }
  0x31   : > { %s1967_s23 = scalar_lea.vmem %s1966_s22, 16384  ;;  %p1968_p2 = scmp.lt.s32.totalorder %s2171_s10, %s1966_s22 }
  0x32   : > { %p1963_p4 = pnand %p1961_p12, %p1949_p0  ;;  %p1969_p1 = scmp.lt.s32.totalorder %s1967_s23, %s1960_s19 }
  0x34   : > { %p1964_p13 = pneg %p1963_p4  ;;  %p1970_p5 = por %p1969_p1, %p1968_p2 }
  0x36   : > { %p1971_p6 = pnand %p1970_p5, %p1964_p13 }
  0x38   : > { %1974 = shalt.err (!%p1971_p6)
}
  0x39   : > { %s2047_s24 = smov 512   ;;  %s2048_s25 = smov 32  }
  0x3a   : > { %1763 = dma.hbm_to_vmem [thread:$0]  (!%p2173_p8), %s2169_s26, 8192, %s2171_s10, %s2177_s13, %s2047_s24, %s2047_s24, %s2048_s25  }
  0x3b   : > { %p2919_p0 = scmp.ne.s32.totalorder %s2916_s8, 0 }
  0x3d   : > { %267 = sbr.rel (%p2919_p0) target bundleno = 1557 (0x615), region = 48 }
  0x42   : > { %s269_s9 = sand.u32 1, %s2033_s27   ;;  %p2920_p1 = scmp.ne.s32.totalorder %s2915_s30, 0 }
  0x43   : > { %s1597_s29 = sshll.u32 %s269_s9, 9  ;;  %s270_s14 = scalar_lea.sflag [#allocation7], %s269_s9 }
  0x44   : > { %s2201_s15 = scalar_lea.vmem [#allocation6], %s1597_s29 }
  0x45   : > { %2016 = dma.done.wait (%p2920_p1), %s270_s14, 8192  }
  0x46   : > { %2018 = vsyncadd (%p2920_p1), %s270_s14, 4294959104  ;;  %p2921_p4 = scmp.eq.s32.totalorder %s2119_s4, 0 }
  0x48   : > { %2020 = dma.done.wait (%p2921_p4), [#allocation10], 16384   ;;  %p2922_p5 = pmov %p2921_p4 }
  0x49   : > { %p2923_p6 = scmp.ne.s32.totalorder %s2119_s4, 0 }
  0x4a   : > { %2022 = vsyncadd (%p2922_p5), [#allocation10], 4294950912 }
  0x4b   : > { %307 = sbr.rel (%p2923_p6) target bundleno = 84 (0x54), region = 60 }
  0x50   : > { %vm308_vm0 = vcmask 0   ;;  %v311_v1 = vlaneseq  ;;  %v2049_v2 = vmov -inf   ;;  %v2050_v3 = vmov 0.0  }
  0x51   : > { %309 = vst.msk [vmem:[#allocation2] sm:$0x1] %vm308_vm0, %v2049_v2  ;;  %310 = vst.msk [vmem:[#allocation3] sm:$0x1] %vm308_vm0, %v2050_v3 }
  0x52   : > { %vm313_vm1 = vcmp.lt.s32.totalorder %v311_v1, 512 }
  0x53   : > { %315 = vst.msk [vmem:[#allocation4] sm:$0xf] %vm313_vm1, %v2050_v3 }
  0x54 PF: > { %v411_v4 = vld [vmem:[#allocation9 + $0xf8] sm:$0xff]  ;;  %v410_v6 = vld [vmem:[#allocation9 + $0xf0] sm:$0xff]  ;;  %v409_v8 = vld [vmem:[#allocation9 + $0xe8] sm:$0xff]  ;;  %vm2052_vm2 = vmmov 0   ;;  %s1616_s11 = sshll.u32 %s2119_s4, 7  ;;  %vm1059_vm4 = vcmask 1040384  }
  0x55   : > { %v475_v5 = vld [vmem:[#allocation9 + $0x2f8] sm:$0xff]  ;;  %520 = vmatprep.subr.mxu0 %v411_v4  ;;  %v474_v7 = vld [vmem:[#allocation9 + $0x2f0] sm:$0xff]  ;;  %v473_v9 = vld [vmem:[#allocation9 + $0x2e8] sm:$0xff]  ;;  %vm1085_vm5 = vcmask 0   ;;  %p1617_p8 = scmp.ne.s32.totalorder %s2119_s4, 2 }
  0x56   : > { %681 = vmatprep.subr.mxu1 %v475_v5  ;;  %521 = vmatpush1.msra.mxu0 %v410_v6  ;;  %v408_v10 = vld [vmem:[#allocation9 + $0xe0] sm:$0xff]  ;;  %v407_v12 = vld [vmem:[#allocation9 + $0xd8] sm:$0xff]  ;;  %v406_v14 = vld [vmem:[#allocation9 + $0xd0] sm:$0xff] }
  0x57   : > { %682 = vmatpush1.msra.mxu1 %v474_v7  ;;  %v472_v11 = vld [vmem:[#allocation9 + $0x2e0] sm:$0xff]  ;;  %522 = vmatprep.subr.mxu0 %v409_v8  ;;  %v471_v13 = vld [vmem:[#allocation9 + $0x2d8] sm:$0xff]  ;;  %v470_v15 = vld [vmem:[#allocation9 + $0x2d0] sm:$0xff] }
  0x58   : > { %683 = vmatprep.subr.mxu1 %v473_v9  ;;  %523 = vmatpush1.msra.mxu0 %v408_v10  ;;  %v405_v16 = vld [vmem:[#allocation9 + $0xc8] sm:$0xff]  ;;  %v404_v18 = vld [vmem:[#allocation9 + $0xc0] sm:$0xff]  ;;  %v403_v20 = vld [vmem:[#allocation9 + $0xb8] sm:$0xff] }
  0x59   : > { %684 = vmatpush1.msra.mxu1 %v472_v11  ;;  %v469_v17 = vld [vmem:[#allocation9 + $0x2c8] sm:$0xff]  ;;  %524 = vmatprep.subr.mxu0 %v407_v12  ;;  %v468_v19 = vld [vmem:[#allocation9 + $0x2c0] sm:$0xff]  ;;  %v467_v21 = vld [vmem:[#allocation9 + $0x2b8] sm:$0xff] }
  0x5a   : > { %685 = vmatprep.subr.mxu1 %v471_v13  ;;  %525 = vmatpush1.msra.mxu0 %v406_v14  ;;  %v402_v22 = vld [vmem:[#allocation9 + $0xb0] sm:$0xff]  ;;  %v401_v24 = vld [vmem:[#allocation9 + $0xa8] sm:$0xff]  ;;  %v400_v26 = vld [vmem:[#allocation9 + $0xa0] sm:$0xff] }
  0x5b   : > { %686 = vmatpush1.msra.mxu1 %v470_v15  ;;  %526 = vmatprep.subr.mxu0 %v405_v16  ;;  %v466_v23 = vld [vmem:[#allocation9 + $0x2b0] sm:$0xff]  ;;  %v465_v25 = vld [vmem:[#allocation9 + $0x2a8] sm:$0xff]  ;;  %v464_v27 = vld [vmem:[#allocation9 + $0x2a0] sm:$0xff] }
  0x5c   : > { %687 = vmatprep.subr.mxu1 %v469_v17  ;;  %527 = vmatpush1.msra.mxu0 %v404_v18  ;;  %v399_v28 = vld [vmem:[#allocation9 + $0x98] sm:$0xff]  ;;  %v398_v30 = vld [vmem:[#allocation9 + $0x90] sm:$0xff]  ;;  %v397_v32 = vld [vmem:[#allocation9 + $0x88] sm:$0xff] }
  0x5d   : > { %688 = vmatpush1.msra.mxu1 %v468_v19  ;;  %528 = vmatprep.subr.mxu0 %v403_v20  ;;  %v463_v29 = vld [vmem:[#allocation9 + $0x298] sm:$0xff]  ;;  %v462_v31 = vld [vmem:[#allocation9 + $0x290] sm:$0xff]  ;;  %v461_v33 = vld [vmem:[#allocation9 + $0x288] sm:$0xff] }
  0x5e   : > { %689 = vmatprep.subr.mxu1 %v467_v21  ;;  %529 = vmatpush1.msra.mxu0 %v402_v22  ;;  %v396_v34 = vld [vmem:[#allocation9 + $0x80] sm:$0xff]  ;;  %v395_v36 = vld [vmem:[#allocation9 + $0x78] sm:$0xff]  ;;  %v394_v38 = vld [vmem:[#allocation9 + $0x70] sm:$0xff] }
  0x5f   : > { %690 = vmatpush1.msra.mxu1 %v466_v23  ;;  %530 = vmatprep.subr.mxu0 %v401_v24  ;;  %v460_v35 = vld [vmem:[#allocation9 + $0x280] sm:$0xff]  ;;  %v459_v37 = vld [vmem:[#allocation9 + $0x278] sm:$0xff]  ;;  %v458_v39 = vld [vmem:[#allocation9 + $0x270] sm:$0xff] }
  0x60   : > { %691 = vmatprep.subr.mxu1 %v465_v25  ;;  %531 = vmatpush1.msra.mxu0 %v400_v26  ;;  %v393_v40 = vld [vmem:[#allocation9 + $0x68] sm:$0xff]  ;;  %v392_v42 = vld [vmem:[#allocation9 + $0x60] sm:$0xff]  ;;  %v391_v44 = vld [vmem:[#allocation9 + $0x58] sm:$0xff] }
  0x61   : > { %692 = vmatpush1.msra.mxu1 %v464_v27  ;;  %532 = vmatprep.subr.mxu0 %v399_v28  ;;  %v457_v41 = vld [vmem:[#allocation9 + $0x268] sm:$0xff]  ;;  %v456_v43 = vld [vmem:[#allocation9 + $0x260] sm:$0xff]  ;;  %v455_v45 = vld [vmem:[#allocation9 + $0x258] sm:$0xff] }
  0x62   : > { %693 = vmatprep.subr.mxu1 %v463_v29  ;;  %533 = vmatpush1.msra.mxu0 %v398_v30  ;;  %v390_v46 = vld [vmem:[#allocation9 + $0x50] sm:$0xff]  ;;  %v389_v48 = vld [vmem:[#allocation9 + $0x48] sm:$0xff]  ;;  %v388_v50 = vld [vmem:[#allocation9 + $0x40] sm:$0xff] }
  0x63   : > { %694 = vmatpush1.msra.mxu1 %v462_v31  ;;  %534 = vmatprep.subr.mxu0 %v397_v32  ;;  %v454_v47 = vld [vmem:[#allocation9 + $0x250] sm:$0xff]  ;;  %v453_v49 = vld [vmem:[#allocation9 + $0x248] sm:$0xff]  ;;  %v452_v51 = vld [vmem:[#allocation9 + $0x240] sm:$0xff] }
  0x64   : > { %695 = vmatprep.subr.mxu1 %v461_v33  ;;  %535 = vmatpush1.msra.mxu0 %v396_v34  ;;  %v387_v52 = vld [vmem:[#allocation9 + $0x38] sm:$0xff]  ;;  %v386_v54 = vld [vmem:[#allocation9 + $0x30] sm:$0xff]  ;;  %v385_v56 = vld [vmem:[#allocation9 + $0x28] sm:$0xff] }
  0x65   : > { %696 = vmatpush1.msra.mxu1 %v460_v35  ;;  %536 = vmatprep.subr.mxu0 %v395_v36  ;;  %v451_v53 = vld [vmem:[#allocation9 + $0x238] sm:$0xff]  ;;  %v450_v55 = vld [vmem:[#allocation9 + $0x230] sm:$0xff]  ;;  %v449_v57 = vld [vmem:[#allocation9 + $0x228] sm:$0xff] }
  0x66   : > { %697 = vmatprep.subr.mxu1 %v459_v37  ;;  %537 = vmatpush1.msra.mxu0 %v394_v38  ;;  %v384_v58 = vld [vmem:[#allocation9 + $0x20] sm:$0xff]  ;;  %v383_v60 = vld [vmem:[#allocation9 + $0x18] sm:$0xff]  ;;  %v382_v62 = vld [vmem:[#allocation9 + $0x10] sm:$0xff] }
  0x67   : > { %698 = vmatpush1.msra.mxu1 %v458_v39  ;;  %538 = vmatprep.subr.mxu0 %v393_v40  ;;  %v448_v59 = vld [vmem:[#allocation9 + $0x220] sm:$0xff]  ;;  %v447_v61 = vld [vmem:[#allocation9 + $0x218] sm:$0xff]  ;;  %v446_v63 = vld [vmem:[#allocation9 + $0x210] sm:$0xff] }
  0x68   : > { %699 = vmatprep.subr.mxu1 %v457_v41  ;;  %539 = vmatpush1.msra.mxu0 %v392_v42  ;;  %v381_v0 = vld [vmem:[#allocation9 + $0x8] sm:$0xff]  ;;  %v380_v2 = vld [vmem:[#allocation9] sm:$0xff]  ;;  %v443_v4 = vld [vmem:[#allocation9 + $0x1f8] sm:$0xff] }
  0x69   : > { %700 = vmatpush1.msra.mxu1 %v456_v43  ;;  %540 = vmatprep.subr.mxu0 %v391_v44  ;;  %v445_v1 = vld [vmem:[#allocation9 + $0x208] sm:$0xff]  ;;  %v444_v3 = vld [vmem:[#allocation9 + $0x200] sm:$0xff]  ;;  %v507_v5 = vld [vmem:[#allocation9 + $0x3f8] sm:$0xff] }
  0x6a   : > { %701 = vmatprep.subr.mxu1 %v455_v45  ;;  %541 = vmatpush1.msra.mxu0 %v390_v46  ;;  %v442_v6 = vld [vmem:[#allocation9 + $0x1f0] sm:$0xff]  ;;  %v441_v8 = vld [vmem:[#allocation9 + $0x1e8] sm:$0xff]  ;;  %v440_v10 = vld [vmem:[#allocation9 + $0x1e0] sm:$0xff] }
  0x6b   : > { %702 = vmatpush1.msra.mxu1 %v454_v47  ;;  %542 = vmatprep.subr.mxu0 %v389_v48  ;;  %v506_v7 = vld [vmem:[#allocation9 + $0x3f0] sm:$0xff]  ;;  %v505_v9 = vld [vmem:[#allocation9 + $0x3e8] sm:$0xff]  ;;  %v504_v11 = vld [vmem:[#allocation9 + $0x3e0] sm:$0xff] }
  0x6c   : > { %703 = vmatprep.subr.mxu1 %v453_v49  ;;  %543 = vmatpush1.msra.mxu0 %v388_v50  ;;  %v439_v12 = vld [vmem:[#allocation9 + $0x1d8] sm:$0xff]  ;;  %v438_v14 = vld [vmem:[#allocation9 + $0x1d0] sm:$0xff]  ;;  %v437_v16 = vld [vmem:[#allocation9 + $0x1c8] sm:$0xff] }
  0x6d   : > { %704 = vmatpush1.msra.mxu1 %v452_v51  ;;  %544 = vmatprep.subr.mxu0 %v387_v52  ;;  %v503_v13 = vld [vmem:[#allocation9 + $0x3d8] sm:$0xff]  ;;  %v502_v15 = vld [vmem:[#allocation9 + $0x3d0] sm:$0xff]  ;;  %v501_v17 = vld [vmem:[#allocation9 + $0x3c8] sm:$0xff] }
  0x6e   : > { %705 = vmatprep.subr.mxu1 %v451_v53  ;;  %545 = vmatpush1.msra.mxu0 %v386_v54  ;;  %v436_v18 = vld [vmem:[#allocation9 + $0x1c0] sm:$0xff]  ;;  %v435_v20 = vld [vmem:[#allocation9 + $0x1b8] sm:$0xff]  ;;  %v434_v22 = vld [vmem:[#allocation9 + $0x1b0] sm:$0xff] }
  0x6f   : > { %706 = vmatpush1.msra.mxu1 %v450_v55  ;;  %546 = vmatprep.subr.mxu0 %v385_v56  ;;  %v500_v19 = vld [vmem:[#allocation9 + $0x3c0] sm:$0xff]  ;;  %v499_v21 = vld [vmem:[#allocation9 + $0x3b8] sm:$0xff]  ;;  %v498_v23 = vld [vmem:[#allocation9 + $0x3b0] sm:$0xff] }
  0x70   : > { %707 = vmatprep.subr.mxu1 %v449_v57  ;;  %547 = vmatpush1.msra.mxu0 %v384_v58  ;;  %v433_v24 = vld [vmem:[#allocation9 + $0x1a8] sm:$0xff]  ;;  %v432_v26 = vld [vmem:[#allocation9 + $0x1a0] sm:$0xff]  ;;  %v431_v28 = vld [vmem:[#allocation9 + $0x198] sm:$0xff] }
  0x71   : > { %708 = vmatpush1.msra.mxu1 %v448_v59  ;;  %548 = vmatprep.subr.mxu0 %v383_v60  ;;  %v497_v25 = vld [vmem:[#allocation9 + $0x3a8] sm:$0xff]  ;;  %v496_v27 = vld [vmem:[#allocation9 + $0x3a0] sm:$0xff]  ;;  %v495_v29 = vld [vmem:[#allocation9 + $0x398] sm:$0xff] }
  0x72   : > { %709 = vmatprep.subr.mxu1 %v447_v61  ;;  %549 = vmatpush1.msra.mxu0 %v382_v62  ;;  %v430_v30 = vld [vmem:[#allocation9 + $0x190] sm:$0xff]  ;;  %v429_v32 = vld [vmem:[#allocation9 + $0x188] sm:$0xff]  ;;  %v428_v34 = vld [vmem:[#allocation9 + $0x180] sm:$0xff] }
  0x73   : > { %710 = vmatpush1.msra.mxu1 %v446_v63  ;;  %550 = vmatprep.subr.mxu0 %v381_v0  ;;  %v494_v31 = vld [vmem:[#allocation9 + $0x390] sm:$0xff]  ;;  %v493_v33 = vld [vmem:[#allocation9 + $0x388] sm:$0xff]  ;;  %v492_v35 = vld [vmem:[#allocation9 + $0x380] sm:$0xff] }
  0x74   : > { %711 = vmatprep.subr.mxu1 %v445_v1  ;;  %551 = vmatpush1.msra.mxu0 %v380_v2  ;;  %v427_v36 = vld [vmem:[#allocation9 + $0x178] sm:$0xff]  ;;  %v426_v38 = vld [vmem:[#allocation9 + $0x170] sm:$0xff]  ;;  %v425_v40 = vld [vmem:[#allocation9 + $0x168] sm:$0xff] }
  0x75   : > { %712 = vmatpush1.msra.mxu1 %v444_v3  ;;  %552 = vmatprep.subr.mxu0 %v443_v4  ;;  %v491_v37 = vld [vmem:[#allocation9 + $0x378] sm:$0xff]  ;;  %v490_v39 = vld [vmem:[#allocation9 + $0x370] sm:$0xff]  ;;  %v489_v41 = vld [vmem:[#allocation9 + $0x368] sm:$0xff] }
  0x76   : > { %713 = vmatprep.subr.mxu1 %v507_v5  ;;  %553 = vmatpush2.msra.mxu0 %v442_v6  ;;  %v424_v42 = vld [vmem:[#allocation9 + $0x160] sm:$0xff]  ;;  %v423_v44 = vld [vmem:[#allocation9 + $0x158] sm:$0xff]  ;;  %v422_v46 = vld [vmem:[#allocation9 + $0x150] sm:$0xff] }
  0x77   : > { %714 = vmatpush2.msra.mxu1 %v506_v7  ;;  %554 = vmatprep.subr.mxu0 %v441_v8  ;;  %v488_v43 = vld [vmem:[#allocation9 + $0x360] sm:$0xff]  ;;  %v487_v45 = vld [vmem:[#allocation9 + $0x358] sm:$0xff]  ;;  %v486_v47 = vld [vmem:[#allocation9 + $0x350] sm:$0xff] }
  0x78   : > { %715 = vmatprep.subr.mxu1 %v505_v9  ;;  %555 = vmatpush2.msra.mxu0 %v440_v10  ;;  %v421_v48 = vld [vmem:[#allocation9 + $0x148] sm:$0xff]  ;;  %v420_v50 = vld [vmem:[#allocation9 + $0x140] sm:$0xff]  ;;  %v419_v52 = vld [vmem:[#allocation9 + $0x138] sm:$0xff] }
  0x79   : > { %716 = vmatpush2.msra.mxu1 %v504_v11  ;;  %556 = vmatprep.subr.mxu0 %v439_v12  ;;  %v485_v49 = vld [vmem:[#allocation9 + $0x348] sm:$0xff]  ;;  %v484_v51 = vld [vmem:[#allocation9 + $0x340] sm:$0xff]  ;;  %v483_v53 = vld [vmem:[#allocation9 + $0x338] sm:$0xff] }
  0x7a   : > { %717 = vmatprep.subr.mxu1 %v503_v13  ;;  %557 = vmatpush2.msra.mxu0 %v438_v14  ;;  %v418_v54 = vld [vmem:[#allocation9 + $0x130] sm:$0xff]  ;;  %v417_v56 = vld [vmem:[#allocation9 + $0x128] sm:$0xff]  ;;  %v416_v58 = vld [vmem:[#allocation9 + $0x120] sm:$0xff] }
  0x7b   : > { %718 = vmatpush2.msra.mxu1 %v502_v15  ;;  %558 = vmatprep.subr.mxu0 %v437_v16  ;;  %v482_v55 = vld [vmem:[#allocation9 + $0x330] sm:$0xff]  ;;  %v481_v57 = vld [vmem:[#allocation9 + $0x328] sm:$0xff]  ;;  %v480_v59 = vld [vmem:[#allocation9 + $0x320] sm:$0xff] }
  0x7c   : > { %719 = vmatprep.subr.mxu1 %v501_v17  ;;  %559 = vmatpush2.msra.mxu0 %v436_v18  ;;  %v415_v60 = vld [vmem:[#allocation9 + $0x118] sm:$0xff]  ;;  %v414_v62 = vld [vmem:[#allocation9 + $0x110] sm:$0xff]  ;;  %v413_v0 = vld [vmem:[#allocation9 + $0x108] sm:$0xff] }
  0x7d   : > { %720 = vmatpush2.msra.mxu1 %v500_v19  ;;  %560 = vmatprep.subr.mxu0 %v435_v20  ;;  %v479_v61 = vld [vmem:[#allocation9 + $0x318] sm:$0xff]  ;;  %v478_v63 = vld [vmem:[#allocation9 + $0x310] sm:$0xff]  ;;  %v477_v1 = vld [vmem:[#allocation9 + $0x308] sm:$0xff] }
  0x7e   : > { %721 = vmatprep.subr.mxu1 %v499_v21  ;;  %561 = vmatpush2.msra.mxu0 %v434_v22  ;;  %v412_v2 = vld [vmem:[#allocation9 + $0x100] sm:$0xff]  ;;  %v2214_v3 = vld [vmem:[%s2201_s15 + $0x8] sm:$0xff]  ;;  %v319_v5 = vld [vmem:[%s2201_s15 + $0x18] sm:$0xff] }
  0x7f   : > { %722 = vmatpush2.msra.mxu1 %v498_v23  ;;  %562 = vmatprep.subr.mxu0 %v433_v24  ;;  %v476_v4 = vld [vmem:[#allocation9 + $0x300] sm:$0xff]  ;;  %v318_v7 = vld [vmem:[%s2201_s15 + $0x10] sm:$0xff]  ;;  %v2223_v8 = vld [vmem:[%s2201_s15 + $0x28] sm:$0xff] }
  0x80   : > { %723 = vmatprep.subr.mxu1 %v497_v25  ;;  %563 = vmatpush2.msra.mxu0 %v432_v26  ;;  %v2218_v6 = vld [vmem:[%s2201_s15] sm:$0xff]  ;;  %v2226_v9 = vld [vmem:[%s2201_s15 + $0x38] sm:$0xff]  ;;  %v2235_v11 = vld [vmem:[%s2201_s15 + $0x30] sm:$0xff] }
  0x81   : > { %724 = vmatpush2.msra.mxu1 %v496_v27  ;;  %564 = vmatprep.subr.mxu0 %v431_v28  ;;  %2924 = vst [vmem:[#allocation15_spill] sm:$0xff] %v2226_v9  ;;  %v2232_v10 = vld [vmem:[%s2201_s15 + $0x20] sm:$0xff]  ;;  %2925 = vst [vmem:[#allocation16_spill] sm:$0xff] %v2235_v11  ;;  %v2238_v12 = vld [vmem:[%s2201_s15 + $0x1e8] sm:$0xff] }
  0x82   : > { %725 = vmatprep.subr.mxu1 %v495_v29  ;;  %565 = vmatpush2.msra.mxu0 %v430_v30  ;;  %v2241_v13 = vld [vmem:[%s2201_s15 + $0x48] sm:$0xff]  ;;  %v2244_v14 = vld [vmem:[%s2201_s15 + $0x58] sm:$0xff]  ;;  %v2247_v15 = vld [vmem:[%s2201_s15 + $0x1e0] sm:$0xff] }
  0x83   : > { %726 = vmatpush2.msra.mxu1 %v494_v31  ;;  %566 = vmatprep.subr.mxu0 %v429_v32  ;;  %2926 = vst [vmem:[#allocation17_spill] sm:$0xff] %v2244_v14  ;;  %v2256_v16 = vld [vmem:[%s2201_s15 + $0x40] sm:$0xff]  ;;  %v2259_v17 = vld [vmem:[%s2201_s15 + $0x50] sm:$0xff]  ;;  %v2262_v18 = vld [vmem:[%s2201_s15 + $0x1c8] sm:$0xff] }
  0x84   : > { %727 = vmatprep.subr.mxu1 %v493_v33  ;;  %567 = vmatpush2.msra.mxu0 %v428_v34  ;;  %2927 = vst [vmem:[#allocation18_spill] sm:$0xff] %v2259_v17  ;;  %v2265_v19 = vld [vmem:[%s2201_s15 + $0x68] sm:$0xff]  ;;  %v2268_v20 = vld [vmem:[%s2201_s15 + $0x78] sm:$0xff]  ;;  %v2271_v21 = vld [vmem:[%s2201_s15 + $0x1c0] sm:$0xff] }
  0x85   : > { %728 = vmatpush2.msra.mxu1 %v492_v35  ;;  %568 = vmatprep.subr.mxu0 %v427_v36  ;;  %2928 = vst [vmem:[#allocation19_spill] sm:$0xff] %v2268_v20  ;;  %v2280_v22 = vld [vmem:[%s2201_s15 + $0x60] sm:$0xff]  ;;  %v2283_v23 = vld [vmem:[%s2201_s15 + $0x70] sm:$0xff]  ;;  %v2286_v24 = vld [vmem:[%s2201_s15 + $0x1a8] sm:$0xff] }
  0x86   : > { %729 = vmatprep.subr.mxu1 %v491_v37  ;;  %569 = vmatpush2.msra.mxu0 %v426_v38  ;;  %2929 = vst [vmem:[#allocation20_spill] sm:$0xff] %v2283_v23  ;;  %v2289_v25 = vld [vmem:[%s2201_s15 + $0x88] sm:$0xff]  ;;  %v2292_v26 = vld [vmem:[%s2201_s15 + $0x98] sm:$0xff]  ;;  %v2295_v27 = vld [vmem:[%s2201_s15 + $0x1a0] sm:$0xff] }
  0x87   : > { %730 = vmatpush2.msra.mxu1 %v490_v39  ;;  %570 = vmatprep.subr.mxu0 %v425_v40  ;;  %2930 = vst [vmem:[#allocation21_spill] sm:$0xff] %v2292_v26  ;;  %v2304_v28 = vld [vmem:[%s2201_s15 + $0x80] sm:$0xff]  ;;  %v2307_v29 = vld [vmem:[%s2201_s15 + $0x90] sm:$0xff]  ;;  %v2310_v30 = vld [vmem:[%s2201_s15 + $0x188] sm:$0xff] }
  0x88   : > { %731 = vmatprep.subr.mxu1 %v489_v41  ;;  %571 = vmatpush2.msra.mxu0 %v424_v42  ;;  %2931 = vst [vmem:[#allocation22_spill] sm:$0xff] %v2307_v29  ;;  %v2313_v31 = vld [vmem:[%s2201_s15 + $0xa8] sm:$0xff]  ;;  %v2316_v32 = vld [vmem:[%s2201_s15 + $0xb8] sm:$0xff]  ;;  %v2319_v33 = vld [vmem:[%s2201_s15 + $0x180] sm:$0xff] }
  0x89   : > { %732 = vmatpush2.msra.mxu1 %v488_v43  ;;  %572 = vmatprep.subr.mxu0 %v423_v44  ;;  %2932 = vst [vmem:[#allocation23_spill] sm:$0xff] %v2316_v32  ;;  %v2328_v34 = vld [vmem:[%s2201_s15 + $0xa0] sm:$0xff]  ;;  %v2331_v35 = vld [vmem:[%s2201_s15 + $0xb0] sm:$0xff]  ;;  %v361_v36 = vld [vmem:[%s2201_s15 + $0x168] sm:$0xff] }
  0x8a   : > { %733 = vmatprep.subr.mxu1 %v487_v45  ;;  %573 = vmatpush2.msra.mxu0 %v422_v46  ;;  %2933 = vst [vmem:[#allocation24_spill] sm:$0xff] %v2331_v35  ;;  %v341_v37 = vld [vmem:[%s2201_s15 + $0xc8] sm:$0xff]  ;;  %v2336_v38 = vld [vmem:[%s2201_s15 + $0xd8] sm:$0xff]  ;;  %v360_v39 = vld [vmem:[%s2201_s15 + $0x160] sm:$0xff] }
  0x8b   : > { %734 = vmatpush2.msra.mxu1 %v486_v47  ;;  %574 = vmatprep.subr.mxu0 %v421_v48  ;;  %2934 = vst [vmem:[#allocation25_spill] sm:$0xff] %v2336_v38  ;;  %v340_v40 = vld [vmem:[%s2201_s15 + $0xc0] sm:$0xff]  ;;  %v2344_v41 = vld [vmem:[%s2201_s15 + $0xd0] sm:$0xff]  ;;  %v357_v42 = vld [vmem:[%s2201_s15 + $0x148] sm:$0xff] }
  0x8c   : > { %735 = vmatprep.subr.mxu1 %v485_v49  ;;  %575 = vmatpush2.msra.mxu0 %v420_v50  ;;  %2935 = vst [vmem:[#allocation26_spill] sm:$0xff] %v2344_v41  ;;  %v345_v43 = vld [vmem:[%s2201_s15 + $0xe8] sm:$0xff]  ;;  %v2349_v44 = vld [vmem:[%s2201_s15 + $0xf8] sm:$0xff]  ;;  %v356_v45 = vld [vmem:[%s2201_s15 + $0x140] sm:$0xff] }
  0x8d   : > { %736 = vmatpush2.msra.mxu1 %v484_v51  ;;  %576 = vmatprep.subr.mxu0 %v419_v52  ;;  %2936 = vst [vmem:[#allocation27_spill] sm:$0xff] %v2349_v44  ;;  %v344_v46 = vld [vmem:[%s2201_s15 + $0xe0] sm:$0xff]  ;;  %v2356_v47 = vld [vmem:[%s2201_s15 + $0xf0] sm:$0xff]  ;;  %v353_v48 = vld [vmem:[%s2201_s15 + $0x128] sm:$0xff] }
  0x8e   : > { %737 = vmatprep.subr.mxu1 %v483_v53  ;;  %577 = vmatpush2.msra.mxu0 %v418_v54  ;;  %2937 = vst [vmem:[#allocation28_spill] sm:$0xff] %v2356_v47  ;;  %v349_v49 = vld [vmem:[%s2201_s15 + $0x108] sm:$0xff]  ;;  %v2361_v50 = vld [vmem:[%s2201_s15 + $0x118] sm:$0xff]  ;;  %v352_v51 = vld [vmem:[%s2201_s15 + $0x120] sm:$0xff] }
  0x8f   : > { %738 = vmatpush2.msra.mxu1 %v482_v55  ;;  %578 = vmatprep.subr.mxu0 %v417_v56  ;;  %2938 = vst [vmem:[#allocation29_spill] sm:$0xff] %v2361_v50  ;;  %v348_v52 = vld [vmem:[%s2201_s15 + $0x100] sm:$0xff]  ;;  %v2368_v53 = vld [vmem:[%s2201_s15 + $0x110] sm:$0xff]  ;;  %v2371_v54 = vld [vmem:[%s2201_s15 + $0x138] sm:$0xff] }
  0x90   : > { %739 = vmatprep.subr.mxu1 %v481_v57  ;;  %579 = vmatpush2.msra.mxu0 %v416_v58  ;;  %2939 = vst [vmem:[#allocation30_spill] sm:$0xff] %v2368_v53  ;;  %2940 = vst [vmem:[#allocation31_spill] sm:$0xff] %v2371_v54  ;;  %v2376_v55 = vld [vmem:[%s2201_s15 + $0x130] sm:$0xff]  ;;  %v2379_v56 = vld [vmem:[%s2201_s15 + $0x158] sm:$0xff] }
  0x91   : > { %740 = vmatpush2.msra.mxu1 %v480_v59  ;;  %580 = vmatprep.subr.mxu0 %v415_v60  ;;  %2941 = vst [vmem:[#allocation32_spill] sm:$0xff] %v2376_v55  ;;  %v2384_v57 = vld [vmem:[%s2201_s15 + $0x150] sm:$0xff]  ;;  %v2387_v58 = vld [vmem:[%s2201_s15 + $0x178] sm:$0xff] }
  0x92   : > { %741 = vmatprep.subr.mxu1 %v479_v61  ;;  %581 = vmatpush2.msra.mxu0 %v414_v62  ;;  %2942 = vst [vmem:[#allocation33_spill] sm:$0xff] %v2384_v57  ;;  %v2392_v59 = vld [vmem:[%s2201_s15 + $0x170] sm:$0xff]  ;;  %v2395_v60 = vld [vmem:[%s2201_s15 + $0x198] sm:$0xff] }
  0x93   : > { %742 = vmatpush2.msra.mxu1 %v478_v63  ;;  %582 = vmatprep.subr.mxu0 %v413_v0  ;;  %v2403_v61 = vld [vmem:[%s2201_s15 + $0x190] sm:$0xff]  ;;  %v2406_v62 = vld [vmem:[%s2201_s15 + $0x1b8] sm:$0xff] }
  0x94   : > { %743 = vmatprep.subr.mxu1 %v477_v1  ;;  %583 = vmatpush2.msra.mxu0 %v412_v2  ;;  %v2415_v63 = vld [vmem:[%s2201_s15 + $0x1b0] sm:$0xff]  ;;  %v2418_v0 = vld [vmem:[%s2201_s15 + $0x1d8] sm:$0xff] }
  0x95   : > { %584 = vmatprep.mubr.f32.mxu0 %v2214_v3  ;;  %744 = vmatpush2.msra.mxu1 %v476_v4  ;;  %v2427_v1 = vld [vmem:[%s2201_s15 + $0x1d0] sm:$0xff]  ;;  %v2430_v2 = vld [vmem:[%s2201_s15 + $0x1f8] sm:$0xff] }
  0x96   : > { %745 = vmatprep.mubr.f32.mxu1 %v319_v5  ;;  %585 = vmatmul.mubr.f32.vlgmr.msra.gmra.mxu0 %v2218_v6  ;;  %v2439_v4 = vld [vmem:[%s2201_s15 + $0x1f0] sm:$0xff]  ;;  %v2889_v5 = vmov 0.0  }
  0x97   : > { %746 = vmatmul.mubr.f32.vlgmr.msra.gmra.mxu1 %v318_v7  ;;  %590 = vmatprep.mubr.f32.mxu0 %v2223_v8  ;;  %v2887_v7 = vlaneseq }
  0x98   : > { %751 = vmatprep.mubr.f32.mxu1 %v2226_v9  ;;  %1098 = vmatprep.subr.mxu1 %v2238_v12 }
  0x99   : > { %1099 = vmatpush1.msra.mxu1 %v2247_v15  ;;  %1711 = vmatprep.subr.mxu0 %v2889_v5 }
  0x9a   : > { %591 = vmatmul.mubr.f32.gmra.mxu0 %v2232_v10  ;;  %1100 = vmatprep.subr.mxu1 %v2262_v18 }
  0x9b   : > { %752 = vmatmul.mubr.f32.gmra.mxu1 %v2235_v11  ;;  %596 = vmatprep.mubr.f32.mxu0 %v2241_v13 }
  0x9c   : > { %757 = vmatprep.mubr.f32.mxu1 %v2244_v14  ;;  %1101 = vmatpush1.msra.mxu1 %v2271_v21 }
  0x9d   : > { %1102 = vmatprep.subr.mxu1 %v2286_v24 }
  0x9e   : > { %597 = vmatmul.mubr.f32.gmra.mxu0 %v2256_v16  ;;  %1103 = vmatpush1.msra.mxu1 %v2295_v27 }
  0x9f   : > { %758 = vmatmul.mubr.f32.gmra.mxu1 %v2259_v17  ;;  %602 = vmatprep.mubr.f32.mxu0 %v2265_v19 }
  0xa0   : > { %763 = vmatprep.mubr.f32.mxu1 %v2268_v20  ;;  %1104 = vmatprep.subr.mxu1 %v2310_v30 }
  0xa1   : > { %1105 = vmatpush1.msra.mxu1 %v2319_v33 }
  0xa2   : > { %603 = vmatmul.mubr.f32.gmra.mxu0 %v2280_v22  ;;  %1106 = vmatprep.subr.mxu1 %v361_v36 }
  0xa3   : > { %764 = vmatmul.mubr.f32.gmra.mxu1 %v2283_v23  ;;  %608 = vmatprep.mubr.f32.mxu0 %v2289_v25 }
  0xa4   : > { %769 = vmatprep.mubr.f32.mxu1 %v2292_v26  ;;  %1107 = vmatpush1.msra.mxu1 %v360_v39 }
  0xa5   : > { %1108 = vmatprep.subr.mxu1 %v357_v42 }
  0xa6   : > { %609 = vmatmul.mubr.f32.gmra.mxu0 %v2304_v28  ;;  %1109 = vmatpush1.msra.mxu1 %v356_v45 }
  0xa7   : > { %770 = vmatmul.mubr.f32.gmra.mxu1 %v2307_v29  ;;  %614 = vmatprep.mubr.f32.mxu0 %v2313_v31 }
  0xa8   : > { %775 = vmatprep.mubr.f32.mxu1 %v2316_v32  ;;  %1110 = vmatprep.subr.mxu1 %v353_v48 }
  0xa9   : > { %1111 = vmatpush1.msra.mxu1 %v352_v51 }
  0xaa   : > { %615 = vmatmul.mubr.f32.gmra.mxu0 %v2328_v34  ;;  %1112 = vmatprep.subr.mxu1 %v349_v49 }
  0xab   : > { %776 = vmatmul.mubr.f32.gmra.mxu1 %v2331_v35  ;;  %620 = vmatprep.mubr.f32.mxu0 %v341_v37 }
  0xac   : > { %781 = vmatprep.mubr.f32.mxu1 %v2336_v38  ;;  %1113 = vmatpush1.msra.mxu1 %v348_v52 }
  0xad   : > { %1114 = vmatprep.subr.mxu1 %v345_v43 }
  0xae   : > { %621 = vmatmul.mubr.f32.gmra.mxu0 %v340_v40  ;;  %1115 = vmatpush1.msra.mxu1 %v344_v46 }
  0xaf   : > { %782 = vmatmul.mubr.f32.gmra.mxu1 %v2344_v41  ;;  %626 = vmatprep.mubr.f32.mxu0 %v345_v43 }
  0xb0   : > { %787 = vmatprep.mubr.f32.mxu1 %v2349_v44  ;;  %1116 = vmatprep.subr.mxu1 %v341_v37 }
  0xb1   : > { %1117 = vmatpush1.msra.mxu1 %v340_v40 }
  0xb2   : > { %627 = vmatmul.mubr.f32.gmra.mxu0 %v344_v46  ;;  %1118 = vmatprep.subr.mxu1 %v2313_v31 }
  0xb3   : > { %788 = vmatmul.mubr.f32.gmra.mxu1 %v2356_v47  ;;  %632 = vmatprep.mubr.f32.mxu0 %v349_v49 }
  0xb4   : > { %793 = vmatprep.mubr.f32.mxu1 %v2361_v50  ;;  %1119 = vmatpush1.msra.mxu1 %v2328_v34 }
  0xb5   : > { %1120 = vmatprep.subr.mxu1 %v2289_v25 }
  0xb6   : > { %633 = vmatmul.mubr.f32.gmra.mxu0 %v348_v52  ;;  %1121 = vmatpush1.msra.mxu1 %v2304_v28 }
  0xb7   : > { %794 = vmatmul.mubr.f32.gmra.mxu1 %v2368_v53  ;;  %638 = vmatprep.mubr.f32.mxu0 %v353_v48 }
  0xb8   : > { %799 = vmatprep.mubr.f32.mxu1 %v2371_v54  ;;  %1122 = vmatprep.subr.mxu1 %v2265_v19 }
  0xb9   : > { %1123 = vmatpush1.msra.mxu1 %v2280_v22 }
  0xba   : > { %639 = vmatmul.mubr.f32.gmra.mxu0 %v352_v51  ;;  %1124 = vmatprep.subr.mxu1 %v2241_v13 }
  0xbb   : > { %800 = vmatmul.mubr.f32.gmra.mxu1 %v2376_v55  ;;  %644 = vmatprep.mubr.f32.mxu0 %v357_v42 }
  0xbc   : > { %805 = vmatprep.mubr.f32.mxu1 %v2379_v56  ;;  %1125 = vmatpush1.msra.mxu1 %v2256_v16 }
  0xbd   : > { %1126 = vmatprep.subr.mxu1 %v2223_v8 }
  0xbe   : > { %645 = vmatmul.mubr.f32.gmra.mxu0 %v356_v45  ;;  %1127 = vmatpush1.msra.mxu1 %v2232_v10  ;;  %v508_v10 = vld [vmem:[%s2877_s2] sm:$0x3] }
  0xbf   : > { %806 = vmatmul.mubr.f32.gmra.mxu1 %v2384_v57  ;;  %650 = vmatprep.mubr.f32.mxu0 %v361_v36 }
  0xc0   : > { %811 = vmatprep.mubr.f32.mxu1 %v2387_v58  ;;  %1128 = vmatprep.subr.mxu1 %v2214_v3 }
  0xc1   : > { %1129 = vmatpush1.msra.mxu1 %v2218_v6 }
  0xc2   : > { %651 = vmatmul.mubr.f32.gmra.mxu0 %v360_v39 }
  0xc3   : > { %812 = vmatmul.mubr.f32.gmra.mxu1 %v2392_v59  ;;  %656 = vmatprep.mubr.f32.mxu0 %v2310_v30 }
  0xc4   : > { %817 = vmatprep.mubr.f32.mxu1 %v2395_v60 }
  0xc6   : > { %657 = vmatmul.mubr.f32.gmra.mxu0 %v2319_v33 }
  0xc7   : > { %818 = vmatmul.mubr.f32.gmra.mxu1 %v2403_v61  ;;  %662 = vmatprep.mubr.f32.mxu0 %v2286_v24 }
  0xc8   : > { %823 = vmatprep.mubr.f32.mxu1 %v2406_v62 }
  0xca   : > { %663 = vmatmul.mubr.f32.gmra.mxu0 %v2295_v27 }
  0xcb   : > { %824 = vmatmul.mubr.f32.gmra.mxu1 %v2415_v63  ;;  %668 = vmatprep.mubr.f32.mxu0 %v2262_v18 }
  0xcc   : > { %829 = vmatprep.mubr.f32.mxu1 %v2418_v0 }
  0xce   : > { %669 = vmatmul.mubr.f32.gmra.mxu0 %v2271_v21 }
  0xcf   : > { %830 = vmatmul.mubr.f32.gmra.mxu1 %v2427_v1  ;;  %674 = vmatprep.mubr.f32.mxu0 %v2238_v12  ;;  %v2450_v12 = vshrl.u32 %v2887_v7, 7 }
  0xd0   : > { %835 = vmatprep.mubr.f32.mxu1 %v2430_v2 }
  0xd1   : > { %2943 = vst [vmem:[#allocation34_spill] sm:$0xff] %v2450_v12  ;;  %v2453_v8 = vsub.s32 0, %v2450_v12  ;;  %v2886_v3 = vsub.s32 1, %v2450_v12 }
  0xd2   : > { %675 = vmatmul.mubr.f32.gmra.mxu0 %v2247_v15 }
  0xd3   : > { %836 = vmatmul.mubr.f32.gmra.mxu1 %v2439_v4  ;;  %2944 = vst [vmem:[#allocation35_spill] sm:$0xff] %v2453_v8  ;;  %v2460_v6 = vrot.slane %v508_v10, %v2453_v8  ;;  %v2464_v13 = vrot.slane %v508_v10, %v2886_v3  ;;  %1743 = vmatprep.mubr.msk.f32.mxu0 %vm2052_vm2, %v2889_v5 }
  0xd4   : > { %1162 = vmatprep.mubr.f32.mxu1 %v2889_v5 }
 0x156   : > { %v586_v15 = vpop.f32.mrf.mxu0 }
 0x157   : > { %v747_v16 = vpop.f32.mrf.mxu1  ;;  %v587_v18 = vadd.f32 %v586_v15, %v2460_v6 }
 0x158   : > { %v588_v19 = vpop.f32.mrf.mxu0 }
 0x159   : > { %v749_v21 = vpop.f32.mrf.mxu1  ;;  %v748_v22 = vadd.f32 %v747_v16, %v587_v18  ;;  %v589_v24 = vadd.f32 %v588_v19, %v2464_v13 }
 0x15a   : > { %v592_v25 = vpop.f32.mrf.mxu0 }
 0x15b   : > { %v753_v27 = vpop.f32.mrf.mxu1  ;;  %v750_v28 = vadd.f32 %v749_v21, %v589_v24  ;;  %v593_v30 = vadd.f32 %v592_v25, %v2460_v6 }
 0x15c   : > { %v594_v31 = vpop.f32.mrf.mxu0 }
 0x15d   : > { %v755_v33 = vpop.f32.mrf.mxu1  ;;  %v1600_v34 = vmul.f32 -1.442695, %v750_v28  ;;  %v754_v36 = vadd.f32 %v753_v27, %v593_v30  ;;  %v595_v37 = vadd.f32 %v594_v31, %v2464_v13 }
 0x15e   : > { %v598_v39 = vpop.f32.mrf.mxu0 }
 0x15f   : > { %v759_v40 = vpop.f32.mrf.mxu1  ;;  %1816 = vpow2.f32 %v1600_v34  ;;  %v756_v42 = vadd.f32 %v755_v33, %v595_v37  ;;  %v599_v43 = vadd.f32 %v598_v39, %v2460_v6 }
 0x160   : > { %v600_v45 = vpop.f32.mrf.mxu0 }
 0x161   : > { %v761_v46 = vpop.f32.mrf.mxu1  ;;  %v1601_v48 = vmul.f32 -1.442695, %v756_v42  ;;  %v760_v49 = vadd.f32 %v759_v40, %v599_v43  ;;  %v601_v51 = vadd.f32 %v600_v45, %v2464_v13 }
 0x162   : > { %v604_v52 = vpop.f32.mrf.mxu0 }
 0x163   : > { %v765_v10 = vpop.f32.mrf.mxu1  ;;  %1818 = vpow2.f32 %v1601_v48  ;;  %v762_v15 = vadd.f32 %v761_v46, %v601_v51  ;;  %v605_v16 = vadd.f32 %v604_v52, %v2460_v6 }
 0x164   : > { %v606_v18 = vpop.f32.mrf.mxu0 }
 0x165   : > { %v767_v19 = vpop.f32.mrf.mxu1  ;;  %v1602_v21 = vmul.f32 -1.442695, %v762_v15  ;;  %v2473_v24 = vadd.f32 %v765_v10, %v605_v16  ;;  %v607_v25 = vadd.f32 %v606_v18, %v2464_v13 }
 0x166   : > { %v610_v27 = vpop.f32.mrf.mxu0 }
 0x167   : > { %v771_v28 = vpop.f32.mrf.mxu1  ;;  %1820 = vpow2.f32 %v1602_v21  ;;  %v768_v30 = vadd.f32 %v767_v19, %v607_v25  ;;  %v611_v31 = vadd.f32 %v610_v27, %v2460_v6 }
 0x168   : > { %v612_v33 = vpop.f32.mrf.mxu0 }
 0x169   : > { %v773_v34 = vpop.f32.mrf.mxu1  ;;  %v1603_v37 = vmul.f32 -1.442695, %v768_v30  ;;  %v2477_v39 = vadd.f32 %v771_v28, %v611_v31  ;;  %v613_v40 = vadd.f32 %v612_v33, %v2464_v13 }
 0x16a   : > { %v616_v42 = vpop.f32.mrf.mxu0 }
 0x16b   : > { %v777_v43 = vpop.f32.mrf.mxu1  ;;  %1822 = vpow2.f32 %v1603_v37  ;;  %v774_v45 = vadd.f32 %v773_v34, %v613_v40  ;;  %v617_v46 = vadd.f32 %v616_v42, %v2460_v6 }
 0x16c   : > { %v1817_v48 = vpop.eup %1816  ;;  %v618_v51 = vpop.f32.mrf.mxu0  ;;  %1824 = vtanh.f32 %v748_v22 }
 0x16d   : > { %v779_v52 = vpop.f32.mrf.mxu1  ;;  %v906_v10 = vadd.f32 1.0, %v1817_v48  ;;  %v1604_v15 = vmul.f32 -1.442695, %v774_v45  ;;  %v2481_v16 = vadd.f32 %v777_v43, %v617_v46  ;;  %v619_v18 = vadd.f32 %v618_v51, %v2464_v13 }
 0x16e   : > { %v622_v19 = vpop.f32.mrf.mxu0 }
 0x16f   : > { %v783_v21 = vpop.f32.mrf.mxu1  ;;  %1826 = vrcp.f32 %v906_v10  ;;  %v780_v25 = vadd.f32 %v779_v52, %v619_v18  ;;  %v623_v27 = vadd.f32 %v622_v19, %v2460_v6 }
 0x170   : > { %v1819_v28 = vpop.eup %1818  ;;  %1828 = vpow2.f32 %v1604_v15  ;;  %v624_v30 = vpop.f32.mrf.mxu0 }
 0x171   : > { %v785_v31 = vpop.f32.mrf.mxu1  ;;  %v907_v33 = vadd.f32 1.0, %v1819_v28  ;;  %v1605_v34 = vmul.f32 -1.442695, %v780_v25  ;;  %v2485_v37 = vadd.f32 %v783_v21, %v623_v27  ;;  %1830 = vtanh.f32 %v754_v36 }
 0x172   : > { %v625_v40 = vadd.f32 %v624_v30, %v2464_v13  ;;  %v628_v42 = vpop.f32.mrf.mxu0 }
 0x173   : > { %v789_v43 = vpop.f32.mrf.mxu1  ;;  %1832 = vrcp.f32 %v907_v33  ;;  %v629_v22 = vadd.f32 %v628_v42, %v2460_v6 }
 0x174   : > { %v1821_v45 = vpop.eup %1820  ;;  %1834 = vpow2.f32 %v1605_v34  ;;  %v786_v46 = vadd.f32 %v785_v31, %v625_v40  ;;  %v630_v48 = vpop.f32.mrf.mxu0 }
 0x175   : > { %v791_v51 = vpop.f32.mrf.mxu1  ;;  %v908_v52 = vadd.f32 1.0, %v1821_v45  ;;  %v2489_v10 = vadd.f32 %v789_v43, %v629_v22  ;;  %v631_v15 = vadd.f32 %v630_v48, %v2464_v13  ;;  %1836 = vtanh.f32 %v760_v49  ;;  %v971_v22 = vld [vmem:[#allocation5] sm:$0x1] }
 0x176   : > { %v1606_v18 = vmul.f32 -1.442695, %v786_v46  ;;  %v634_v36 = vpop.f32.mrf.mxu0 }
 0x177   : > { %v795_v19 = vpop.f32.mrf.mxu1  ;;  %1838 = vrcp.f32 %v908_v52  ;;  %v792_v21 = vadd.f32 %v791_v51, %v631_v15  ;;  %v635_v25 = vadd.f32 %v634_v36, %v2460_v6  ;;  %v2053_v51 = vmov 0  }
 0x178   : > { %v1823_v27 = vpop.eup %1822  ;;  %1840 = vpow2.f32 %v1606_v18  ;;  %v2493_v28 = vpop.f32.mrf.mxu0  ;;  %1814 = vset.pattern.permute.xlu0 %v2053_v51  ;;  %1815 = vset.pattern.permute.xlu1 %v2053_v51 }
 0x179   : > { %v2495_v30 = vpop.f32.mrf.mxu1  ;;  %v909_v31 = vadd.f32 1.0, %v1823_v27  ;;  %v1607_v33 = vmul.f32 -1.442695, %v792_v21  ;;  %v2497_v34 = vadd.f32 %v795_v19, %v635_v25  ;;  %1842 = vtanh.f32 %v2473_v24  ;;  %v1825_v42 = vpop.eup %1824  ;;  %974 = vperm.xlu0 %1814, %v971_v22  }
 0x17a   : > { %v640_v49 = vpop.f32.mrf.mxu0 }
 0x17b   : > { %v801_v40 = vpop.f32.mrf.mxu1  ;;  %1844 = vrcp.f32 %v909_v31  ;;  %v641_v43 = vadd.f32 %v640_v49, %v2460_v6 }
 0x17c   : > { %v1827_v45 = vpop.eup %1826  ;;  %1846 = vpow2.f32 %v1607_v33  ;;  %v2502_v46 = vpop.f32.mrf.mxu0 }
 0x17d   : > { %v2504_v48 = vpop.f32.mrf.mxu1  ;;  %v1829_v52 = vpop.eup %1828  ;;  %v2506_v15 = vadd.f32 %v801_v40, %v641_v43  ;;  %v2508_v24 = vmul.f32 %v1827_v45, %v1825_v42  ;;  %1848 = vtanh.f32 %v2477_v39 }
 0x17e   : > { %v910_v18 = vadd.f32 1.0, %v1829_v52  ;;  %v2510_v36 = vpop.f32.mrf.mxu0  ;;  %v1831_v21 = vpop.eup %1830 }
 0x17f   : > { %v2512_v19 = vpop.f32.mrf.mxu1 }
 0x180   : > { %v1833_v25 = vpop.eup %1832  ;;  %1850 = vrcp.f32 %v910_v18  ;;  %v2515_v27 = vpop.f32.mrf.mxu0 }
 0x181   : > { %v2517_v31 = vpop.f32.mrf.mxu1  ;;  %v1835_v33 = vpop.eup %1834  ;;  %v2523_v43 = vmul.f32 %v1833_v25, %v1831_v21  ;;  %1852 = vtanh.f32 %v2481_v16 }
 0x182   : > { %v911_v49 = vadd.f32 1.0, %v1835_v33  ;;  %v2519_v40 = vpop.f32.mrf.mxu0  ;;  %v1837_v22 = vpop.eup %1836 }
 0x183   : > { %v2521_v42 = vpop.f32.mrf.mxu1 }
 0x184   : > { %v1839_v45 = vpop.eup %1838  ;;  %1854 = vrcp.f32 %v911_v49  ;;  %v654_v39 = vpop.f32.mrf.mxu0 }
 0x185   : > { %v815_v51 = vpop.f32.mrf.mxu1  ;;  %v1841_v52 = vpop.eup %1840  ;;  %v2530_v33 = vmul.f32 %v1839_v45, %v1837_v22  ;;  %1856 = vtanh.f32 %v2485_v37  ;;  %v655_v54 = vadd.f32 %v654_v39, %v2464_v13 }
 0x186   : > { %v912_v18 = vadd.f32 1.0, %v1841_v52  ;;  %v2526_v3 = vpop.f32.mrf.mxu0  ;;  %v1843_v5 = vpop.eup %1842 }
 0x187   : > { %v2528_v7 = vpop.f32.mrf.mxu1 }
 0x188   : > { %v1845_v21 = vpop.eup %1844  ;;  %1858 = vrcp.f32 %v912_v18  ;;  %v660_v25 = vpop.f32.mrf.mxu0 }
 0x189   : > { %v821_v12 = vpop.f32.mrf.mxu1  ;;  %v1847_v16 = vpop.eup %1846  ;;  %v2537_v52 = vmul.f32 %v1845_v21, %v1843_v5  ;;  %1860 = vtanh.f32 %v2489_v10 }
 0x18a   : > { %v913_v8 = vadd.f32 1.0, %v1847_v16  ;;  %v2533_v49 = vpop.f32.mrf.mxu0  ;;  %v1849_v9 = vpop.eup %1848 }
 0x18b   : > { %v2535_v11 = vpop.f32.mrf.mxu1 }
 0x18c   : > { %1862 = vrcp.f32 %v913_v8  ;;  %v666_v22 = vpop.f32.mrf.mxu0 }
 0x18d   : > { %v827_v45 = vpop.f32.mrf.mxu1  ;;  %v1851_v17 = vpop.eup %1850  ;;  %v667_v26 = vadd.f32 %v666_v22, %v2464_v13 }
 0x18e   : > { %v670_v37 = vpop.f32.mrf.mxu0  ;;  %v2540_v18 = vmul.f32 %v1851_v17, %v1849_v9  ;;  %v1853_v23 = vpop.eup %1852  ;;  %v661_v9 = vadd.f32 %v660_v25, %v2464_v13 }
 0x18f   : > { %v831_v14 = vpop.f32.mrf.mxu1  ;;  %v828_v17 = vadd.f32 %v827_v45, %v667_v26  ;;  %v816_v26 = vadd.f32 %v815_v51, %v655_v54 }
 0x190   : > { %v672_v20 = vpop.f32.mrf.mxu0 }
 0x191   : > { %v833_v16 = vpop.f32.mrf.mxu1  ;;  %v1855_v29 = vpop.eup %1854  ;;  %v673_v5 = vadd.f32 %v672_v20, %v2464_v13  ;;  %v1613_v57 = vmul.f32 -1.442695, %v828_v17 }
 0x192   : > { %v676_v21 = vpop.f32.mrf.mxu0  ;;  %v2544_v10 = vmul.f32 %v1855_v29, %v1853_v23  ;;  %v1857_v8 = vpop.eup %1856  ;;  %v822_v29 = vadd.f32 %v821_v12, %v661_v9 }
 0x193   : > { %v837_v35 = vpop.f32.mrf.mxu1  ;;  %v834_v32 = vadd.f32 %v833_v16, %v673_v5  ;;  %v677_v12 = vadd.f32 %v676_v21, %v2460_v6 }
 0x194   : > { %v678_v41 = vpop.f32.mrf.mxu0 }
 0x195   : > { %v1859_v38 = vpop.eup %1858  ;;  %v679_v47 = vadd.f32 %v678_v41, %v2464_v13  ;;  %v1614_v44 = vmul.f32 -1.442695, %v834_v32  ;;  %v839_v53 = vpop.f32.mrf.mxu1  ;;  %v649_v41 = vadd.f32 %v2515_v27, %v2464_v13  ;;  %v1612_v32 = vmul.f32 -1.442695, %v822_v29 }
 0x196   : > { %v2548_v50 = vmul.f32 %v1859_v38, %v1857_v8  ;;  %v1861_v55 = vpop.eup %1860  ;;  %v643_v38 = vadd.f32 %v2502_v46, %v2464_v13  ;;  %v838_v54 = vadd.f32 %v837_v35, %v677_v12 }
 0x197   : > { %v840_v22 = vadd.f32 %v839_v53, %v679_v47  ;;  %1864 = vpow2.f32 %v1614_v44  ;;  %v810_v47 = vadd.f32 %v2517_v31, %v649_v41  ;;  %v1611_v53 = vmul.f32 -1.442695, %v816_v26 }
 0x198   : > { %v637_v44 = vadd.f32 %v2493_v28, %v2464_v13  ;;  %v665_v13 = vadd.f32 %v2533_v49, %v2460_v6  ;;  %v653_v49 = vadd.f32 %v2519_v40, %v2460_v6 }
 0x199   : > { %v1863_v20 = vpop.eup %1862  ;;  %v1615_v23 = vmul.f32 -1.442695, %v840_v22  ;;  %v1610_v39 = vmul.f32 -1.442695, %v810_v47 }
 0x19a   : > { %v2551_v16 = vmul.f32 %v1863_v20, %v1861_v55  ;;  %v804_v55 = vadd.f32 %v2504_v48, %v643_v38  ;;  %v798_v46 = vadd.f32 %v2495_v30, %v637_v44  ;;  %v826_v30 = vadd.f32 %v2535_v11, %v665_v13 }
 0x19b   : > { %1866 = vpow2.f32 %v1615_v23  ;;  %v814_v11 = vadd.f32 %v2521_v42, %v653_v49  ;;  %v2945_v38 = vmov 0.0   ;;  %v2966_v49 = vld [vmem:[#allocation35_spill] sm:$0xff] }
 0x19c   : > { %1868 = vpow2.f32 %v1613_v57  ;;  %v671_v57 = vadd.f32 %v670_v37, %v2460_v6  ;;  %v1609_v25 = vmul.f32 -1.442695, %v804_v55  ;;  %v1608_v48 = vmul.f32 -1.442695, %v798_v46 }
 0x19d   : > { %1870 = vpow2.f32 %v1612_v32  ;;  %v659_v37 = vadd.f32 %v2526_v3, %v2460_v6  ;;  %v647_v3 = vadd.f32 %v2510_v36, %v2460_v6 }
 0x19e   : > { %1872 = vpow2.f32 %v1611_v53  ;;  %v832_v28 = vadd.f32 %v831_v14, %v671_v57 }
 0x19f   : > { %1874 = vpow2.f32 %v1610_v39  ;;  %v820_v14 = vadd.f32 %v2528_v7, %v659_v37  ;;  %v808_v40 = vadd.f32 %v2512_v19, %v647_v3 }
 0x1a0   : > { %1876 = vtanh.f32 %v838_v54 }
 0x1a4   : > { %v1865_v27 = vpop.eup %1864 }
 0x1a5   : > { %v920_v31 = vadd.f32 1.0, %v1865_v27 }
 0x1a8   : > { %v1867_v51 = vpop.eup %1866 }
 0x1a9   : > { %v921_v45 = vadd.f32 1.0, %v1867_v51  ;;  %v1869_v5 = vpop.eup %1868 }
 0x1aa   : > { %v919_v21 = vadd.f32 1.0, %v1869_v5  ;;  %v1871_v35 = vpop.eup %1870 }
 0x1ab   : > { %1878 = vrcp.f32 %v921_v45  ;;  %v918_v8 = vadd.f32 1.0, %v1871_v35  ;;  %v1873_v9 = vpop.eup %1872  ;;  %v2965_v35 = vlaneseq }
 0x1ac   : > { %1880 = vpow2.f32 %v1609_v25  ;;  %v917_v17 = vadd.f32 1.0, %v1873_v9  ;;  %v1875_v22 = vpop.eup %1874 }
 0x1ad   : > { %1882 = vrcp.f32 %v920_v31  ;;  %v1877_v20 = vpop.eup %1876  ;;  %v916_v41 = vadd.f32 1.0, %v1875_v22  ;;  %v1052_v37 = vand.u32 127, %v2965_v35  ;;  %vm1272_vm6 = vcmp.lt.s32.totalorder %v2965_v35, 512 }
 0x1ae   : > { %1884 = vtanh.f32 %v832_v28  ;;  %v2964_v28 = vld [vmem:[#allocation16_spill] sm:$0xff] }
 0x1af   : > { %1886 = vpow2.f32 %v1608_v48  ;;  %v1916_v48 = vld [vmem:[%s2201_s15 + $0x18] sm:$0xff] }
 0x1b0   : > { %1888 = vrcp.f32 %v919_v21  ;;  %v1917_v21 = vld [vmem:[%s2201_s15 + $0x10] sm:$0xff] }
 0x1b1   : > { %1890 = vtanh.f32 %v826_v30  ;;  %v1054_v30 = vstv %s1616_s11 }
 0x1b2   : > { %1892 = vrcp.f32 %v918_v8  ;;  %v1055_v9 = vadd.s32 %v1054_v30, %v1052_v37 }
 0x1b3   : > { %1894 = vtanh.f32 %v820_v14 }
 0x1b4   : > { %1896 = vrcp.f32 %v917_v17  ;;  %vm1056_vm3 = vcmp.lt.s32.totalorder %v1055_v9, 300 }
 0x1b5   : > { %1898 = vtanh.f32 %v814_v11 }
 0x1b6   : > { %1900 = vrcp.f32 %v916_v41 }
 0x1b7   : > { %1902 = vtanh.f32 %v808_v40 }
 0x1b8   : > { %v1879_v23 = vpop.eup %1878 }
 0x1b9   : > { %v1881_v29 = vpop.eup %1880  ;;  %v969_v26 = vmul.f32 %v1879_v23, %v1877_v20  ;;  %v1058_v23 = vld [vmem:[#allocation2] sm:$0x1] }
 0x1ba   : > { %v1883_v32 = vpop.eup %1882  ;;  %v915_v53 = vadd.f32 1.0, %v1881_v29 }
 0x1bb   : > { %1712 = vmatpush3.xpose.msra.mxu0 %v969_v26  ;;  %v1885_v7 = vpop.eup %1884 }
 0x1bc   : > { %1713 = vmatprep.subr.mxu0 %v2945_v38  ;;  %v1887_v47 = vpop.eup %1886  ;;  %v968_v6 = vmul.f32 %v1885_v7, %v1883_v32  ;;  %1904 = vrcp.f32 %v915_v53 }
 0x1bd   : > { %v1889_v36 = vpop.eup %1888  ;;  %v914_v12 = vadd.f32 1.0, %v1887_v47  ;;  %1906 = vtanh.f32 %v2506_v15 }
 0x1be   : > { %v1891_v42 = vpop.eup %1890 }
 0x1bf   : > { %1714 = vmatpush3.xpose.msra.mxu0 %v968_v6  ;;  %v967_v44 = vmul.f32 %v1891_v42, %v1889_v36  ;;  %v1893_v55 = vpop.eup %1892  ;;  %1908 = vrcp.f32 %v914_v12  ;;  %v1079_v42 = vld [vmem:[#allocation3] sm:$0x1] }
 0x1c0   : > { %1715 = vmatprep.subr.mxu0 %v2945_v38  ;;  %v1895_v19 = vpop.eup %1894  ;;  %1910 = vtanh.f32 %v2497_v34 }
 0x1c1   : > { %v966_v39 = vmul.f32 %v1895_v19, %v1893_v55  ;;  %v1897_v27 = vpop.eup %1896  ;;  %v2054_v19 = vmov 1966171168  }
 0x1c2   : > { %v1899_v54 = vpop.eup %1898 }
 0x1c3   : > { %1716 = vmatpush3.xpose.msra.mxu0 %v967_v44  ;;  %v965_v57 = vmul.f32 %v1899_v54, %v1897_v27  ;;  %v1901_v51 = vpop.eup %1900 }
 0x1c4   : > { %1717 = vmatprep.subr.mxu0 %v2945_v38  ;;  %v1903_v46 = vpop.eup %1902 }
 0x1c5   : > { %v964_v15 = vmul.f32 %v1903_v46, %v1901_v51  ;;  %v2967_v46 = vld [vmem:[#allocation34_spill] sm:$0xff] }
 0x1c7   : > { %1718 = vmatpush3.xpose.msra.mxu0 %v966_v39  ;;  %v1247_v39 = vunpack.c.l.s4 %v2054_v19 }
 0x1c8   : > { %1719 = vmatprep.subr.mxu0 %v2945_v38 }
 0x1c9   : > { %v1905_v25 = vpop.eup %1904  ;;  %v1248_v27 = vunpack.c.0.s8 %v1247_v39 }
 0x1ca   : > { %v1907_v31 = vpop.eup %1906 }
 0x1cb   : > { %1720 = vmatpush3.xpose.msra.mxu0 %v965_v57  ;;  %v963_v45 = vmul.f32 %v1907_v31, %v1905_v25 }
 0x1cc   : > { %1721 = vmatprep.subr.mxu0 %v2945_v38  ;;  %v1909_v5 = vpop.eup %1908 }
 0x1cd   : > { %v1911_v34 = vpop.eup %1910 }
 0x1ce   : > { %v962_v13 = vmul.f32 %v1911_v34, %v1909_v5 }
 0x1cf   : > { %1722 = vmatpush3.xpose.msra.mxu0 %v964_v15  ;;  %v1251_v15 = vsub.s32 %v1248_v27, %v2967_v46 }
 0x1d0   : > { %1723 = vmatprep.subr.mxu0 %v2945_v38 }
 0x1d3   : > { %1724 = vmatpush3.xpose.msra.mxu0 %v963_v45 }
 0x1d4   : > { %1725 = vmatprep.subr.mxu0 %v2945_v38 }
 0x1d7   : > { %1726 = vmatpush3.xpose.msra.mxu0 %v962_v13 }
 0x1d8   : > { %1727 = vmatprep.subr.mxu0 %v2945_v38 }
 0x1db   : > { %1728 = vmatpush3.xpose.msra.mxu0 %v2551_v16  ;;  %v2963_v16 = vld [vmem:[#allocation15_spill] sm:$0xff] }
 0x1dc   : > { %1729 = vmatprep.subr.mxu0 %v2945_v38 }
 0x1df   : > { %1730 = vmatpush3.xpose.msra.mxu0 %v2548_v50  ;;  %v970_v50 = vld [vmem:[%s2878_s3] sm:$0x1] }
 0x1e0   : > { %1731 = vmatprep.subr.mxu0 %v2945_v38 }
 0x1e3   : > { %1732 = vmatpush3.xpose.msra.mxu0 %v2544_v10  ;;  %v2962_v10 = vld [vmem:[#allocation18_spill] sm:$0xff] }
 0x1e4   : > { %1733 = vmatprep.subr.mxu0 %v2945_v38 }
 0x1e7   : > { %1734 = vmatpush3.xpose.msra.mxu0 %v2540_v18  ;;  %v2961_v18 = vld [vmem:[#allocation17_spill] sm:$0xff] }
 0x1e8   : > { %1735 = vmatprep.subr.mxu0 %v2945_v38 }
 0x1eb   : > { %1736 = vmatpush3.xpose.msra.mxu0 %v2537_v52  ;;  %v2960_v52 = vld [vmem:[#allocation20_spill] sm:$0xff] }
 0x1ec   : > { %1737 = vmatprep.subr.mxu0 %v2945_v38 }
 0x1ef   : > { %1738 = vmatpush3.xpose.msra.mxu0 %v2530_v33  ;;  %v2959_v33 = vld [vmem:[#allocation19_spill] sm:$0xff] }
 0x1f0   : > { %1739 = vmatprep.subr.mxu0 %v2945_v38 }
 0x1f3   : > { %1740 = vmatpush3.xpose.msra.mxu0 %v2523_v43  ;;  %v2958_v43 = vld [vmem:[#allocation22_spill] sm:$0xff] }
 0x1f4   : > { %1741 = vmatprep.subr.mxu0 %v2945_v38  ;;  %v975_v8 = vpop.permute.xlu0 %974 }
 0x1f5   : > { %v980_v14 = vrot.slane %v975_v8, %v2966_v49 }
 0x1f7   : > { %1742 = vmatpush3.xpose.msra.mxu0 %v2508_v24  ;;  %v2957_v24 = vld [vmem:[#allocation21_spill] sm:$0xff] }
 0x1f8   : > { %1169 = vmatprep.subr.mxu0 %v2430_v2  ;;  %v2946_v2 = vld [vmem:[#allocation33_spill] sm:$0xff] }
 0x1fa   : > { %1744 = vmatmul.mubr.f32.vlgmr.msra.gmra.mxu0 %v970_v50 }
 0x1fb   : > { %1170 = vmatpush1.msra.mxu0 %v2439_v4  ;;  %1233 = vmatprep.mubr.f32.mxu0 %v2945_v38  ;;  %v2947_v4 = vld [vmem:[#allocation31_spill] sm:$0xff] }
 0x1fc   : > { %1171 = vmatprep.subr.mxu0 %v2418_v0  ;;  %v2948_v0 = vld [vmem:[#allocation32_spill] sm:$0xff] }
 0x1fd   : > { %1172 = vmatpush1.msra.mxu0 %v2427_v1  ;;  %v2949_v1 = vld [vmem:[#allocation29_spill] sm:$0xff] }
 0x1fe   : > { %1173 = vmatprep.subr.mxu0 %v2406_v62  ;;  %v2950_v62 = vld [vmem:[#allocation30_spill] sm:$0xff] }
 0x1ff   : > { %1174 = vmatpush1.msra.mxu0 %v2415_v63  ;;  %v2956_v63 = vld [vmem:[#allocation24_spill] sm:$0xff] }
 0x200   : > { %1175 = vmatprep.subr.mxu0 %v2395_v60  ;;  %v2951_v60 = vld [vmem:[#allocation27_spill] sm:$0xff] }
 0x201   : > { %1176 = vmatpush1.msra.mxu0 %v2403_v61  ;;  %v2952_v61 = vld [vmem:[#allocation28_spill] sm:$0xff] }
 0x202   : > { %1177 = vmatprep.subr.mxu0 %v2387_v58  ;;  %v2953_v58 = vld [vmem:[#allocation25_spill] sm:$0xff] }
 0x203   : > { %1178 = vmatpush1.msra.mxu0 %v2392_v59  ;;  %v2954_v59 = vld [vmem:[#allocation26_spill] sm:$0xff] }
 0x204   : > { %1179 = vmatprep.subr.mxu0 %v2379_v56  ;;  %v2955_v56 = vld [vmem:[#allocation23_spill] sm:$0xff] }
 0x205   : > { %1180 = vmatpush1.msra.mxu0 %v2946_v2  ;;  %v1087_v2 = vld [vmem:[#allocation4] sm:$0xf] }
 0x206   : > { %1181 = vmatprep.subr.mxu0 %v2947_v4 }
 0x207   : > { %1182 = vmatpush1.msra.mxu0 %v2948_v0 }
 0x208   : > { %1183 = vmatprep.subr.mxu0 %v2949_v1 }
 0x209   : > { %1184 = vmatpush1.msra.mxu0 %v2950_v62 }
 0x20a   : > { %1185 = vmatprep.subr.mxu0 %v2951_v60 }
 0x20b   : > { %1186 = vmatpush1.msra.mxu0 %v2952_v61 }
 0x20c   : > { %1187 = vmatprep.subr.mxu0 %v2953_v58 }
 0x20d   : > { %1188 = vmatpush1.msra.mxu0 %v2954_v59 }
 0x20e   : > { %1189 = vmatprep.subr.mxu0 %v2955_v56 }
 0x20f   : > { %1190 = vmatpush1.msra.mxu0 %v2956_v63 }
 0x210   : > { %1191 = vmatprep.subr.mxu0 %v2957_v24 }
 0x211   : > { %1192 = vmatpush1.msra.mxu0 %v2958_v43 }
 0x212   : > { %1193 = vmatprep.subr.mxu0 %v2959_v33 }
 0x213   : > { %1194 = vmatpush1.msra.mxu0 %v2960_v52 }
 0x214   : > { %1195 = vmatprep.subr.mxu0 %v2961_v18 }
 0x215   : > { %1196 = vmatpush1.msra.mxu0 %v2962_v10 }
 0x216   : > { %1197 = vmatprep.subr.mxu0 %v2963_v16 }
 0x217   : > { %1198 = vmatpush1.msra.mxu0 %v2964_v28 }
 0x218   : > { %1199 = vmatprep.subr.mxu0 %v1916_v48 }
 0x219   : > { %1200 = vmatpush1.msra.mxu0 %v1917_v21 }
 0x2ba   : > { %v1047_v17 = vpop.f32.mrf.mxu0 }
 0x2bb   : > { %v1048_v22 = vadd.f32 %v1047_v17, %v980_v14 }
 0x2bc   : > { %v1745_v20 = vpop.f32.mrf.mxu0 }
 0x2bd   : > { %v1057_v3 = vsel %vm1056_vm3, %v1048_v22, -inf }
 0x2be   : > { %v1060_v11 = vsel %vm1059_vm4, %v1057_v3, -inf }
 0x2bf   : > { %1061 = vmax.xlane.f32.xlu0 %v1060_v11 }
 0x348   : > { %v1062_v29 = vpop.xlane.xlu0 %1061 }
 0x349   : > { %v1063_v41 = vmax.f32 %v1058_v23, %v1062_v29 }
 0x34b   : > { %v1064_v26 = vsub.f32 %v1058_v23, %v1063_v41  ;;  %1275 = vst.msk [vmem:[#allocation2] sm:$0x1] %vm1085_vm5, %v1063_v41  ;;  %1069 = vperm.xlu1 %1815, %v1063_v41  }
 0x34d   : > { %v1065_v32 = vmul.f32 1.442695, %v1064_v26 }
 0x34f   : > { %1912 = vpow2.f32 %v1065_v32 }
 0x35c   : > { %v1913_v40 = vpop.eup %1912 }
 0x35d   : > { %1090 = vperm.xlu0 %1814, %v1913_v40   ;;  %v1080_v12 = vmul.f32 %v1913_v40, %v1079_v42 }
 0x3c6   : > { %v1070_v7 = vpop.permute.xlu1 %1069 }
 0x3c7   : > { %v1075_v38 = vrot.slane %v1070_v7, %v2966_v49 }
 0x3c9   : > { %v1076_v47 = vsub.f32 %v1057_v3, %v1075_v38 }
 0x3cb   : > { %v1077_v53 = vmul.f32 1.442695, %v1076_v47 }
 0x3cd   : > { %1914 = vpow2.f32 %v1077_v53 }
 0x3d8   : > { %v1091_v51 = vpop.permute.xlu0 %1090 }
 0x3d9   : > { %v1096_v34 = vrot.slane %v1091_v51, %v2966_v49 }
 0x3da   : > { %v1915_v6 = vpop.eup %1914 }
 0x3db   : > { %1163 = vmatmul.mubr.f32.vlgmr.msra.gmra.mxu1 %v1915_v6  ;;  %1234 = vmatmul.mubr.f32.vlgmr.msra.gmra.mxu0 %v1915_v6  ;;  %v1081_v36 = vsel %vm1059_vm4, %v1915_v6, 0.0  ;;  %v1097_v0 = vmul.f32 %v1096_v34, %v1087_v2 }
 0x3dc   : > { %1082 = vadd.xlane.f32.xlu1 %v1081_v36 }
 0x465   : > { %v1083_v44 = vpop.xlane.xlu1 %1082 }
 0x466   : > { %v1084_v55 = vadd.f32 %v1083_v44, %v1080_v12 }
 0x468   : > { %1086 = vst.msk [vmem:[#allocation3] sm:$0x1] %vm1085_vm5, %v1084_v55 }
 0x49b   : > { %v1164_v54 = vpop.f32.mrf.mxu1  ;;  %v1235_v57 = vpop.f32.mrf.mxu0 }
 0x49d   : > { %v1166_v25 = vpop.f32.mrf.mxu1  ;;  %v1237_v31 = vpop.f32.mrf.mxu0 }
 0x49e   : > { %v1244_v45 = vcombine.low %v1164_v54, %v1166_v25  ;;  %v1245_v5 = vcombine.low %v1235_v57, %v1237_v31 }
 0x4a0   : > { %v1252_v13 = vrot.slane %v1244_v45, %v1251_v15  ;;  %v1259_v50 = vrot.slane %v1245_v5, %v1251_v15 }
 0x4a2   : > { %v1260_v4 = vcombine.low %v1252_v13, %v1259_v50 }
 0x4a4   : > { %v1267_v1 = vrot.slane %v1260_v4, %v1251_v15  ;;  %1279 = sbr.rel (%p1617_p8) target bundleno = 1542 (0x606), region = 64 }
 0x4a6   : > { %v1269_v62 = vadd.f32 %v1267_v1, %v1097_v0 }
 0x4a8   : > { %1274 = vst.msk [vmem:[#allocation4] sm:$0xf] %vm1272_vm6, %v1269_v62 }
 0x4a9   : > { %v1280_v60 = vld [vmem:[#allocation3] sm:$0x1]  ;;  %v1324_v61 = vld [vmem:[%s2880_s5 + $0xf8] sm:$0xff]  ;;  %v2055_v59 = vmov 0   ;;  %v1323_v24 = vld [vmem:[%s2880_s5 + $0xf0] sm:$0xff]  ;;  %vm1519_vm7 = vcmask 8192  }
 0x4aa   : > { %v1356_v58 = vld [vmem:[%s2880_s5 + $0x1f8] sm:$0xff]  ;;  %1918 = vset.pattern.permute.xlu0 %v2055_v59  ;;  %1919 = vrcp.f32 %v1280_v60  ;;  %1641 = vmatprep.subr.mxu0 %v1324_v61  ;;  %v1355_v43 = vld [vmem:[%s2880_s5 + $0x1f0] sm:$0xff]  ;;  %v1322_v18 = vld [vmem:[%s2880_s5 + $0xe8] sm:$0xff] }
 0x4ab   : > { %v1308_v56 = vld [vmem:[%s2880_s5 + $0x78] sm:$0xff]  ;;  %1676 = vmatprep.subr.mxu1 %v1356_v58  ;;  %v1307_v33 = vld [vmem:[%s2880_s5 + $0x70] sm:$0xff]  ;;  %v1354_v10 = vld [vmem:[%s2880_s5 + $0x1e8] sm:$0xff] }
 0x4ac   : > { %v1340_v63 = vld [vmem:[%s2880_s5 + $0x178] sm:$0xff]  ;;  %1642 = vmatpush3.msra.mxu0 %v1308_v56  ;;  %v1339_v52 = vld [vmem:[%s2880_s5 + $0x170] sm:$0xff]  ;;  %v1306_v16 = vld [vmem:[%s2880_s5 + $0x68] sm:$0xff] }
 0x4ad   : > { %1677 = vmatpush3.msra.mxu1 %v1340_v63  ;;  %1643 = vmatprep.subr.mxu0 %v1323_v24  ;;  %v1338_v28 = vld [vmem:[%s2880_s5 + $0x168] sm:$0xff]  ;;  %v1321_v48 = vld [vmem:[%s2880_s5 + $0xe0] sm:$0xff]  ;;  %v1320_v30 = vld [vmem:[%s2880_s5 + $0xd8] sm:$0xff] }
 0x4ae   : > { %1678 = vmatprep.subr.mxu1 %v1355_v43  ;;  %1644 = vmatpush3.msra.mxu0 %v1307_v33  ;;  %v1353_v21 = vld [vmem:[%s2880_s5 + $0x1e0] sm:$0xff]  ;;  %v1352_v8 = vld [vmem:[%s2880_s5 + $0x1d8] sm:$0xff]  ;;  %v1319_v14 = vld [vmem:[%s2880_s5 + $0xd0] sm:$0xff] }
 0x4af   : > { %1679 = vmatpush3.msra.mxu1 %v1339_v52  ;;  %1645 = vmatprep.subr.mxu0 %v1322_v18  ;;  %v1305_v35 = vld [vmem:[%s2880_s5 + $0x60] sm:$0xff]  ;;  %v1304_v9 = vld [vmem:[%s2880_s5 + $0x58] sm:$0xff]  ;;  %v1351_v17 = vld [vmem:[%s2880_s5 + $0x1d0] sm:$0xff] }
 0x4b0   : > { %1680 = vmatprep.subr.mxu1 %v1354_v10  ;;  %1646 = vmatpush3.msra.mxu0 %v1306_v16  ;;  %v1337_v37 = vld [vmem:[%s2880_s5 + $0x160] sm:$0xff]  ;;  %v1336_v49 = vld [vmem:[%s2880_s5 + $0x158] sm:$0xff]  ;;  %v1303_v22 = vld [vmem:[%s2880_s5 + $0x50] sm:$0xff] }
 0x4b1   : > { %1681 = vmatpush3.msra.mxu1 %v1338_v28  ;;  %1647 = vmatprep.subr.mxu0 %v1321_v48  ;;  %v1335_v20 = vld [vmem:[%s2880_s5 + $0x150] sm:$0xff]  ;;  %v1318_v3 = vld [vmem:[%s2880_s5 + $0xc8] sm:$0xff]  ;;  %v1317_v41 = vld [vmem:[%s2880_s5 + $0xc0] sm:$0xff] }
 0x4b2   : > { %1682 = vmatprep.subr.mxu1 %v1353_v21  ;;  %1648 = vmatpush3.msra.mxu0 %v1305_v35  ;;  %v1350_v11 = vld [vmem:[%s2880_s5 + $0x1c8] sm:$0xff]  ;;  %v1349_v26 = vld [vmem:[%s2880_s5 + $0x1c0] sm:$0xff]  ;;  %v1316_v38 = vld [vmem:[%s2880_s5 + $0xb8] sm:$0xff] }
 0x4b3   : > { %1683 = vmatpush3.msra.mxu1 %v1337_v37  ;;  %1649 = vmatprep.subr.mxu0 %v1320_v30  ;;  %v1302_v23 = vld [vmem:[%s2880_s5 + $0x48] sm:$0xff]  ;;  %v1301_v40 = vld [vmem:[%s2880_s5 + $0x40] sm:$0xff]  ;;  %v1348_v47 = vld [vmem:[%s2880_s5 + $0x1b8] sm:$0xff] }
 0x4b4   : > { %1684 = vmatprep.subr.mxu1 %v1352_v8  ;;  %1650 = vmatpush3.msra.mxu0 %v1304_v9  ;;  %v1334_v29 = vld [vmem:[%s2880_s5 + $0x148] sm:$0xff]  ;;  %v1333_v7 = vld [vmem:[%s2880_s5 + $0x140] sm:$0xff]  ;;  %v1300_v53 = vld [vmem:[%s2880_s5 + $0x38] sm:$0xff] }
 0x4b5   : > { %1685 = vmatpush3.msra.mxu1 %v1336_v49  ;;  %1651 = vmatprep.subr.mxu0 %v1319_v14  ;;  %v1332_v6 = vld [vmem:[%s2880_s5 + $0x138] sm:$0xff]  ;;  %v1315_v36 = vld [vmem:[%s2880_s5 + $0xb0] sm:$0xff]  ;;  %v1314_v55 = vld [vmem:[%s2880_s5 + $0xa8] sm:$0xff] }
 0x4b6   : > { %1686 = vmatprep.subr.mxu1 %v1351_v17  ;;  %1652 = vmatpush3.msra.mxu0 %v1303_v22  ;;  %v1347_v42 = vld [vmem:[%s2880_s5 + $0x1b0] sm:$0xff]  ;;  %v1346_v19 = vld [vmem:[%s2880_s5 + $0x1a8] sm:$0xff]  ;;  %v1313_v54 = vld [vmem:[%s2880_s5 + $0xa0] sm:$0xff] }
 0x4b7   : > { %1687 = vmatpush3.msra.mxu1 %v1335_v20  ;;  %1653 = vmatprep.subr.mxu0 %v1318_v3  ;;  %v1920_v32 = vpop.eup %1919  ;;  %v1299_v12 = vld [vmem:[%s2880_s5 + $0x30] sm:$0xff]  ;;  %v1298_v39 = vld [vmem:[%s2880_s5 + $0x28] sm:$0xff]  ;;  %v1345_v57 = vld [vmem:[%s2880_s5 + $0x1a0] sm:$0xff] }
 0x4b8   : > { %1688 = vmatprep.subr.mxu1 %v1350_v11  ;;  %1654 = vmatpush3.msra.mxu0 %v1302_v23  ;;  %v1331_v44 = vld [vmem:[%s2880_s5 + $0x130] sm:$0xff]  ;;  %v1330_v27 = vld [vmem:[%s2880_s5 + $0x128] sm:$0xff]  ;;  %v1297_v51 = vld [vmem:[%s2880_s5 + $0x20] sm:$0xff] }
 0x4b9   : > { %1285 = vperm.xlu0 %1918, %v1920_v32   ;;  %1689 = vmatpush3.msra.mxu1 %v1334_v29  ;;  %v1329_v46 = vld [vmem:[%s2880_s5 + $0x120] sm:$0xff]  ;;  %v1312_v15 = vld [vmem:[%s2880_s5 + $0x98] sm:$0xff]  ;;  %v1311_v5 = vld [vmem:[%s2880_s5 + $0x90] sm:$0xff] }
 0x4ba   : > { %1655 = vmatprep.subr.mxu0 %v1317_v41  ;;  %1690 = vmatprep.subr.mxu1 %v1349_v26  ;;  %v1344_v25 = vld [vmem:[%s2880_s5 + $0x198] sm:$0xff]  ;;  %v1343_v34 = vld [vmem:[%s2880_s5 + $0x190] sm:$0xff]  ;;  %v1310_v2 = vld [vmem:[%s2880_s5 + $0x88] sm:$0xff] }
 0x4bb   : > { %1656 = vmatpush3.msra.mxu0 %v1301_v40  ;;  %1691 = vmatpush3.msra.mxu1 %v1333_v7  ;;  %v1296_v31 = vld [vmem:[%s2880_s5 + $0x18] sm:$0xff]  ;;  %v1295_v13 = vld [vmem:[%s2880_s5 + $0x10] sm:$0xff]  ;;  %v1342_v4 = vld [vmem:[%s2880_s5 + $0x188] sm:$0xff] }
 0x4bc   : > { %1657 = vmatprep.subr.mxu0 %v1316_v38  ;;  %1692 = vmatprep.subr.mxu1 %v1348_v47  ;;  %v1328_v45 = vld [vmem:[%s2880_s5 + $0x118] sm:$0xff]  ;;  %v1327_v50 = vld [vmem:[%s2880_s5 + $0x110] sm:$0xff]  ;;  %v1294_v0 = vld [vmem:[%s2880_s5 + $0x8] sm:$0xff] }
 0x4bd   : > { %1658 = vmatpush3.msra.mxu0 %v1300_v53  ;;  %1693 = vmatpush3.msra.mxu1 %v1332_v6  ;;  %v1326_v1 = vld [vmem:[%s2880_s5 + $0x108] sm:$0xff]  ;;  %v1309_v62 = vld [vmem:[%s2880_s5 + $0x80] sm:$0xff] }
 0x4be   : > { %1659 = vmatprep.subr.mxu0 %v1315_v36  ;;  %1694 = vmatprep.subr.mxu1 %v1347_v42  ;;  %v1341_v60 = vld [vmem:[%s2880_s5 + $0x180] sm:$0xff]  ;;  %v2968_v63 = vld [vmem:[#allocation35_spill] sm:$0xff] }
 0x4bf   : > { %1660 = vmatpush3.msra.mxu0 %v1299_v12  ;;  %1695 = vmatpush3.msra.mxu1 %v1331_v44  ;;  %v1293_v61 = vld [vmem:[%s2880_s5] sm:$0xff] }
 0x4c0   : > { %1661 = vmatprep.subr.mxu0 %v1314_v55  ;;  %1696 = vmatprep.subr.mxu1 %v1346_v19  ;;  %v1325_v58 = vld [vmem:[%s2880_s5 + $0x100] sm:$0xff] }
 0x4c1   : > { %1662 = vmatpush3.msra.mxu0 %v1298_v39  ;;  %1697 = vmatpush3.msra.mxu1 %v1330_v27  ;;  %v1282_v59 = vld [vmem:[#allocation4] sm:$0xf]  ;;  %v1357_v30 = vld [vmem:[%s2881_s6] sm:$0x1] }
 0x4c2   : > { %1663 = vmatprep.subr.mxu0 %v1313_v54  ;;  %1698 = vmatprep.subr.mxu1 %v1345_v57  ;;  %v2969_v43 = vld [vmem:[#allocation34_spill] sm:$0xff] }
 0x4c3   : > { %1664 = vmatpush3.msra.mxu0 %v1297_v51  ;;  %1699 = vmatpush3.msra.mxu1 %v1329_v46  ;;  %v1373_v33 = vsub.s32 3, %v2969_v43  ;;  %v1369_v52 = vsub.s32 2, %v2969_v43  ;;  %v2970_v10 = vsub.s32 1, %v2969_v43 }
 0x4c4   : > { %1665 = vmatprep.subr.mxu0 %v1312_v15  ;;  %1700 = vmatprep.subr.mxu1 %v1344_v25 }
 0x4c5   : > { %1666 = vmatpush3.msra.mxu0 %v1296_v31  ;;  %1701 = vmatpush3.msra.mxu1 %v1328_v45 }
 0x4c6   : > { %1667 = vmatprep.subr.mxu0 %v1311_v5  ;;  %1702 = vmatprep.subr.mxu1 %v1343_v34 }
 0x4c7   : > { %1668 = vmatpush3.msra.mxu0 %v1295_v13  ;;  %1703 = vmatpush3.msra.mxu1 %v1327_v50 }
 0x4c8   : > { %1669 = vmatprep.subr.mxu0 %v1310_v2  ;;  %1704 = vmatprep.subr.mxu1 %v1342_v4 }
 0x4c9   : > { %1670 = vmatpush3.msra.mxu0 %v1294_v0  ;;  %1705 = vmatpush3.msra.mxu1 %v1326_v1 }
 0x4ca   : > { %1671 = vmatprep.subr.mxu0 %v1309_v62  ;;  %1706 = vmatprep.subr.mxu1 %v1341_v60 }
 0x4cb   : > { %1672 = vmatpush3.msra.mxu0 %v1293_v61  ;;  %1707 = vmatpush3.msra.mxu1 %v1325_v58 }
 0x534   : > { %v1286_v56 = vpop.permute.xlu0 %1285 }
 0x535   : > { %v1291_v24 = vrot.slane %v1286_v56, %v2968_v63 }
 0x537   : > { %v1292_v18 = vmul.f32 %v1291_v24, %v1282_v59 }
 0x539   : > { %v1366_v16 = vrot.slane %v1292_v18, %v2970_v10  ;;  %v1374_v28 = vrot.slane %v1292_v18, %v1373_v33  ;;  %v1362_v48 = vrot.slane %v1292_v18, %v2968_v63  ;;  %v1370_v21 = vrot.slane %v1292_v18, %v1369_v52 }
 0x53b   : > { %1443 = vmatprep.mubr.f32.mxu0 %v1366_v16  ;;  %1513 = vmatprep.mubr.f32.mxu1 %v1374_v28 }
 0x53c   : > { %1444 = vmatmul.mubr.f32.vlgmr.msra.gmra.mxu0 %v1362_v48  ;;  %1514 = vmatmul.mubr.f32.vlgmr.msra.gmra.mxu1 %v1370_v21 }
 0x5fc   : > { %v1673_v35 = vpop.f32.mrf.mxu0  ;;  %v1708_v37 = vpop.f32.mrf.mxu1 }
 0x5fe   : > { %v1674_v8 = vpop.f32.mrf.mxu0  ;;  %v1709_v9 = vpop.f32.mrf.mxu1 }
 0x5ff   : > { %v1675_v49 = vadd.f32 %v1674_v8, %v1673_v35  ;;  %v1710_v17 = vadd.f32 %v1709_v9, %v1708_v37 }
 0x601   : > { %v1446_v14 = vadd.f32 %v1675_v49, %v1357_v30 }
 0x603   : > { %v1516_v22 = vadd.f32 %v1710_v17, %v1446_v14 }
 0x605   : > { %1520 = vst.msk [vmem:[#allocation11] sm:$0x1] %vm1519_vm7, %v1516_v22 }
 0x606 PF: > { %p1767_p3 = scmp.eq.s32.totalorder %s2119_s4, 2  ;;  %s2056_s26 = smov [#allocation11]  }
 0x607   : > { %s1528_s10 = sshll.u32 %s2056_s26, 4  ;;  %s1529_s10 = int_to_ptr.vmem [resolvable:$true] %s1528_s10 }
 0x608   : > { %s1975_s11 = scalar_lea.vmem %s1529_s10, 16  ;;  %s1981_s13 = scalar_lea.vmem %s1529_s10, 32 }
 0x609   : > { %p1976_p7 = scmp.ne.s32.totalorder %s1529_s10, %s1975_s11  ;;  %p1982_p11 = scmp.lt.s32.totalorder %s1529_s10, %s1529_s10 }
 0x60a   : > { %p1983_p12 = scmp.lt.s32.totalorder %s1981_s13, %s1975_s11 }
 0x60b   : > { %p1977_p9 = pnand %p1976_p7, %p1767_p3 }
 0x60c   : > { %p1984_p13 = por %p1983_p12, %p1982_p11 }
 0x60d   : > { %p1978_p10 = pneg %p1977_p9 }
 0x60f   : > { %p1985_p2 = pnand %p1984_p13, %p1978_p10 }
 0x611   : > { %1988 = shalt.err (!%p1985_p2)
}
 0x612   : > { %1753 = dma.vmem_to_hbm [thread:$0]  (%p1767_p3), %s1529_s10, 16, %s2882_s7, [#allocation8]  }
 0x613   : > { %2024 = dma.done.wait (%p1767_p3), [#allocation8], 16  }
 0x614   : > { %2026 = vsyncadd (%p1767_p3), [#allocation8], 4294967280 }
 0x615 PF: > { %p21_p0 = scmp.ge.s32.totalorder %s2145_s12, 5   ;;  %s2971_s26 = smov %s2033_s27 }
 0x616   : > { %s2972_s27 = smov %s2037_s28  ;;  %s2973_s28 = smov %s2162_s20 }
 0x617   : > { %s2974_s29 = smov %s2145_s12  ;;  %23 = sbr.rel (!%p21_p0) target bundleno = 8 (0x8), region = 97 }
 0x61c   :  { %1541 = vsyncpa [#allocation7], 1 }
 0x61d   :  { %1543 = vsyncpa [#allocation7 + $0x1], 1 }
 0x61e   :  { %1544 = vsyncpa [#allocation10], 1 }
 0x61f   :  { %1545 = vsyncpa [#allocation8], 1 }
 0x620   :  { %1547 = vsyncpa [#allocation8 + $0x1], 1 }

</bundles_post_ra>
